<compile_context>
chip_gen: v7x
topology: tpu7x:2x2x1
jax: 0.10.0
libtpu: 0.0.40
codegen_flags: <defaults>
</compile_context>

<pallas_src>
import functools

import jax
import jax.numpy as jnp
import numpy as np
from jax.experimental import pallas as pl
from jax.experimental.pallas import tpu as pltpu

D_MODEL = 32
HEADS = 4
D_FF = 64
EPS = 1e-6
NEG_INF = -1e18


# ----------------------------- kernel helpers -----------------------------

def _layer_norm(x, gamma, beta):
    # PyTorch nn.LayerNorm semantics (biased variance), eps = 1e-6.
    mu = jnp.mean(x, axis=-1, keepdims=True)
    xc = x - mu
    var = jnp.mean(xc * xc, axis=-1, keepdims=True)
    return xc * jax.lax.rsqrt(var + EPS) * gamma + beta


def _softmax_last(x):
    m = jnp.max(x, axis=-1, keepdims=True)
    e = jnp.exp(x - m)
    return e / jnp.sum(e, axis=-1, keepdims=True)


def _dot_nt(a, b):
    # a [M, K], b [N, K] -> [M, N]  (contract last dims, no explicit transpose)
    return jax.lax.dot_general(a, b, (((1,), (1,)), ((), ())),
                               preferred_element_type=jnp.float32)


def _mha(q_in, kv_in, w_ref, b_ref, mask_bool, heads):
    """OpenNMT MultiHeadedAttention over the whole flattened batch.

    q_in [Rq, D], kv_in [Rk, D]; mask_bool [Rq, Rk] already encodes the
    cross-batch block structure plus causal / padding masks.
    w_ref: stacked [4, D, D] = (Wq, Wk, Wv, Wout), b_ref: [4, D].
    Returns (output [Rq, D], first-head attention [Rq, Rk]).
    """
    d_model = q_in.shape[-1]
    dph = d_model // heads
    scale = 1.0 / float(np.sqrt(dph))

    q = jnp.dot(q_in, w_ref[0], preferred_element_type=jnp.float32) + b_ref[0:1, :]
    k = jnp.dot(kv_in, w_ref[1], preferred_element_type=jnp.float32) + b_ref[1:2, :]
    v = jnp.dot(kv_in, w_ref[2], preferred_element_type=jnp.float32) + b_ref[2:3, :]
    wo = w_ref[3]

    out = jnp.zeros_like(q) + b_ref[3:4, :]
    attn0 = None
    for h in range(heads):  # static unroll; one score/ctx matmul per head for ALL batch rows
        sl = slice(h * dph, (h + 1) * dph)
        scores = _dot_nt(q[:, sl] * scale, k[:, sl])            # [Rq, Rk]
        scores = jnp.where(mask_bool, NEG_INF, scores)          # masked_fill(-1e18)
        p = _softmax_last(scores)
        if h == 0:
            attn0 = p
        ctx_h = jnp.dot(p, v[:, sl], preferred_element_type=jnp.float32)
        # ctx @ Wout == sum_h ctx_h @ Wout[h*dph:(h+1)*dph, :]  (avoids lane concat)
        out = out + jnp.dot(ctx_h, wo[sl, :], preferred_element_type=jnp.float32)
    return out, attn0


# --------------------------------- kernel ---------------------------------

def decoder_layer_kernel(x_ref, mem_ref, self_mask_ref, ctx_mask_ref,
                         ln_g_ref, ln_b_ref,
                         self_w_ref, self_b_ref, ctx_w_ref, ctx_b_ref,
                         ffw1_ref, ffb1_ref, ffw2_ref, ffb2_ref,
                         out_ref, attn_ref, all_input_ref,
                         *, heads, batch, tgt_len, src_len):
    x = x_ref[...]                       # [B*T, D]
    mem = mem_ref[...]                   # [B*S, D]
    self_mask = self_mask_ref[...] > 0.0  # [B*T, B*T] (cross-batch | causal | tgt pad)
    ctx_mask = ctx_mask_ref[...] > 0.0    # [B*T, B*S] (cross-batch | src pad)

    # ---- self-attention block ----
    input_norm = _layer_norm(x, ln_g_ref[0:1, :], ln_b_ref[0:1, :])
    all_input_ref[...] = input_norm                      # previous_input is None
    query, _ = _mha(input_norm, input_norm, self_w_ref, self_b_ref, self_mask, heads)
    query = query + x                                    # dropout == identity

    # ---- context attention block ----
    query_norm = _layer_norm(query, ln_g_ref[1:2, :], ln_b_ref[1:2, :])
    mid, attn0 = _mha(query_norm, mem, ctx_w_ref, ctx_b_ref, ctx_mask, heads)
    # first-head context attention: extract per-batch diagonal blocks (static slices)
    for b in range(batch):
        attn_ref[b * tgt_len:(b + 1) * tgt_len, :] = attn0[
            b * tgt_len:(b + 1) * tgt_len, b * src_len:(b + 1) * src_len]

    # ---- position-wise feed-forward ----
    ff_in = mid + query                                  # drop(mid) + query
    ff_norm = _layer_norm(ff_in, ln_g_ref[2:3, :], ln_b_ref[2:3, :])
    inter = jnp.maximum(
        jnp.dot(ff_norm, ffw1_ref[...], preferred_element_type=jnp.float32)
        + ffb1_ref[...], 0.0)
    ff_out = (jnp.dot(inter, ffw2_ref[...], preferred_element_type=jnp.float32)
              + ffb2_ref[...])
    out_ref[...] = ff_out + ff_in


# -------------------------------- wrapper ----------------------------------

def transformer_decoder_layer(inputs, memory_bank, src_pad_mask, tgt_pad_mask,
                              params, heads=HEADS):
    """inputs [B,T,D], memory_bank [B,S,D], src_pad_mask [B,1,S], tgt_pad_mask [B,1,T]."""
    B, T, D = inputs.shape
    S = memory_bank.shape[1]
    F = params["ffw1"].shape[1]

    # ---- host-side prep (plain JAX, outside the kernel): flatten batch, build masks ----
    x_flat = inputs.reshape(B * T, D)
    mem_flat = memory_bank.reshape(B * S, D)

    qi = jnp.arange(B * T)
    qb, qt = qi // T, qi % T                 # batch id / time of each query row
    kb = jnp.arange(B * S) // S              # batch id of each memory row
    tgt_pad = tgt_pad_mask.reshape(B * T) > 0.0
    src_pad = src_pad_mask.reshape(B * S) > 0.0
    # dec_mask = gt(tgt_pad + subsequent(triu,k=1), 0), embedded block-diagonally over the batch
    self_mask = ((qb[:, None] != qb[None, :])
                 | (qt[None, :] > qt[:, None])
                 | tgt_pad[None, :]).astype(jnp.float32)          # [B*T, B*T]
    ctx_mask = ((qb[:, None] != kb[None, :])
                | src_pad[None, :]).astype(jnp.float32)           # [B*T, B*S]

    kernel = functools.partial(decoder_layer_kernel, heads=heads,
                               batch=B, tgt_len=T, src_len=S)

    def full_spec(shape):
        return pl.BlockSpec(shape, lambda i, _n=len(shape): (0,) * _n)

    grid_spec = pltpu.PrefetchScalarGridSpec(
        num_scalar_prefetch=0,
        grid=(1,),                                   # whole batch in one fused step
        in_specs=[
            full_spec((B * T, D)),                   # inputs (batch-flattened)
            full_spec((B * S, D)),                   # memory_bank (batch-flattened)
            full_spec((B * T, B * T)),               # combined self-attn mask
            full_spec((B * T, B * S)),               # combined context-attn mask
            full_spec((3, D)), full_spec((3, D)),    # layernorm gammas / betas
            full_spec((4, D, D)), full_spec((4, D)),  # self-attn W / b
            full_spec((4, D, D)), full_spec((4, D)),  # context-attn W / b
            full_spec((D, F)), full_spec((1, F)),    # FF w_1 / b_1
            full_spec((F, D)), full_spec((1, D)),    # FF w_2 / b_2
        ],
        out_specs=[
            full_spec((B * T, D)),                   # output (flat)
            full_spec((B * T, S)),                   # attn (context, head 0, flat)
            full_spec((B * T, D)),                   # all_input (flat)
        ],
    )
    out_shape = (
        jax.ShapeDtypeStruct((B * T, D), jnp.float32),
        jax.ShapeDtypeStruct((B * T, S), jnp.float32),
        jax.ShapeDtypeStruct((B * T, D), jnp.float32),
    )
    out_flat, attn_flat, all_flat = pl.pallas_call(
        kernel,
        out_shape=out_shape,
        grid_spec=grid_spec,
        compiler_params=pltpu.CompilerParams(
            dimension_semantics=("arbitrary",)),
    )(x_flat, mem_flat, self_mask, ctx_mask,
      params["ln_g"], params["ln_b"],
      params["self_w"], params["self_b"], params["ctx_w"], params["ctx_b"],
      params["ffw1"], params["ffb1"], params["ffw2"], params["ffb2"])

    return (out_flat.reshape(B, T, D),
            attn_flat.reshape(B, T, S),
            all_flat.reshape(B, T, D))


# ------------------------- deterministic parameters -------------------------

def init_params(key, d_model, d_ff):
    ks = jax.random.split(key, 10)
    sd = 1.0 / float(np.sqrt(d_model))
    sf = 1.0 / float(np.sqrt(d_ff))
    return dict(
        ln_g=1.0 + 0.1 * jax.random.normal(ks[0], (3, d_model), jnp.float32),
        ln_b=0.1 * jax.random.normal(ks[1], (3, d_model), jnp.float32),
        self_w=sd * jax.random.normal(ks[2], (4, d_model, d_model), jnp.float32),
        self_b=0.05 * jax.random.normal(ks[3], (4, d_model), jnp.float32),
        ctx_w=sd * jax.random.normal(ks[4], (4, d_model, d_model), jnp.float32),
        ctx_b=0.05 * jax.random.normal(ks[5], (4, d_model), jnp.float32),
        ffw1=sd * jax.random.normal(ks[6], (d_model, d_ff), jnp.float32),
        ffb1=0.05 * jax.random.normal(ks[7], (1, d_ff), jnp.float32),
        ffw2=sf * jax.random.normal(ks[8], (d_ff, d_model), jnp.float32),
        ffb2=0.05 * jax.random.normal(ks[9], (1, d_model), jnp.float32),
    )


# ------------------------------ pure-JAX reference ---------------------------

def reference(inputs, memory_bank, src_pad_mask, tgt_pad_mask, params, heads=HEADS):
    def ln(x, g, b):
        mu = jnp.mean(x, -1, keepdims=True)
        xc = x - mu
        var = jnp.mean(xc * xc, -1, keepdims=True)
        return xc * jax.lax.rsqrt(var + EPS) * g + b

    def mha(q_in, kv_in, w, b, mask):
        Bq, Tq, D = q_in.shape
        Tk = kv_in.shape[1]
        dph = D // heads
        q = q_in @ w[0] + b[0]
        k = kv_in @ w[1] + b[1]
        v = kv_in @ w[2] + b[2]
        split = lambda t, L: t.reshape(Bq, L, heads, dph).transpose(0, 2, 1, 3)
        qh, kh, vh = split(q, Tq), split(k, Tk), split(v, Tk)
        scores = jnp.einsum("bhqd,bhkd->bhqk", qh / np.sqrt(dph), kh)
        scores = jnp.where(mask[:, None, :, :], NEG_INF, scores)
        attn = jax.nn.softmax(scores, axis=-1)
        ctx = jnp.einsum("bhqk,bhkd->bhqd", attn, vh)
        ctx = ctx.transpose(0, 2, 1, 3).reshape(Bq, Tq, D)
        return ctx @ w[3] + b[3], attn[:, 0]

    B, T, _ = inputs.shape
    S = memory_bank.shape[1]
    causal = np.triu(np.ones((T, T), np.float32), k=1)
    dec_mask = (tgt_pad_mask + causal[None]) > 0.0          # [B,1,T] + [1,T,T] -> [B,T,T]
    input_norm = ln(inputs, params["ln_g"][0], params["ln_b"][0])
    all_input = input_norm
    query, _ = mha(input_norm, input_norm, params["self_w"], params["self_b"], dec_mask)
    query = query + inputs
    query_norm = ln(query, params["ln_g"][1], params["ln_b"][1])
    src_mask = jnp.broadcast_to(src_pad_mask > 0.0, (B, T, S))
    mid, attn = mha(query_norm, memory_bank, params["ctx_w"], params["ctx_b"], src_mask)
    ff_in = mid + query
    ff_norm = ln(ff_in, params["ln_g"][2], params["ln_b"][2])
    inter = jax.nn.relu(ff_norm @ params["ffw1"] + params["ffb1"][0])
    out = inter @ params["ffw2"] + params["ffb2"][0] + ff_in
    return out, attn, all_input


# ----------------------------------- main ------------------------------------

if __name__ == "__main__":
    B, T, S, D, F = 2, 8, 16, D_MODEL, D_FF
    key = jax.random.PRNGKey(0)
    k_in, k_mem, k_par = jax.random.split(key, 3)

    inputs = jax.random.normal(k_in, (B, T, D), jnp.float32)
    memory_bank = jax.random.normal(k_mem, (B, S, D), jnp.float32)

    # src_pad_mask [B, 1, S]: 1 where the source key position is padding
    src_pad_mask = jnp.zeros((B, 1, S), jnp.float32).at[1, 0, S - 3:].set(1.0)
    # tgt_pad_mask [B, 1, T]: 1 where the target key position is padding
    tgt_pad_mask = jnp.zeros((B, 1, T), jnp.float32).at[1, 0, T - 2:].set(1.0)

    params = init_params(k_par, D, F)

    out, attn, all_input = transformer_decoder_layer(
        inputs, memory_bank, src_pad_mask, tgt_pad_mask, params)
    jax.block_until_ready((out, attn, all_input))

    r_out, r_attn, r_all = reference(inputs, memory_bank, src_pad_mask,
                                     tgt_pad_mask, params)
    np.testing.assert_allclose(np.asarray(out), np.asarray(r_out), rtol=2e-2, atol=2e-2)
    np.testing.assert_allclose(np.asarray(attn), np.asarray(r_attn), rtol=2e-2, atol=2e-2)
    np.testing.assert_allclose(np.asarray(all_input), np.asarray(r_all), rtol=2e-2, atol=2e-2)

    print("KERNEL_OK")
</pallas_src>

<mosaic_0001>
module attributes {stable_mosaic.version = 11 : i64} {
  func.func @decoder_layer_kernel(%arg0: i32, %arg1: memref<16x32xf32, #tpu.memory_space<vmem>>, %arg2: memref<32x32xf32, #tpu.memory_space<vmem>>, %arg3: memref<16x16xf32, #tpu.memory_space<vmem>>, %arg4: memref<16x32xf32, #tpu.memory_space<vmem>>, %arg5: memref<3x32xf32, #tpu.memory_space<vmem>>, %arg6: memref<3x32xf32, #tpu.memory_space<vmem>>, %arg7: memref<4x32x32xf32, #tpu.memory_space<vmem>>, %arg8: memref<4x32xf32, #tpu.memory_space<vmem>>, %arg9: memref<4x32x32xf32, #tpu.memory_space<vmem>>, %arg10: memref<4x32xf32, #tpu.memory_space<vmem>>, %arg11: memref<32x64xf32, #tpu.memory_space<vmem>>, %arg12: memref<1x64xf32, #tpu.memory_space<vmem>>, %arg13: memref<64x32xf32, #tpu.memory_space<vmem>>, %arg14: memref<1x32xf32, #tpu.memory_space<vmem>>, %arg15: memref<16x32xf32, #tpu.memory_space<vmem>>, %arg16: memref<16x16xf32, #tpu.memory_space<vmem>>, %arg17: memref<16x32xf32, #tpu.memory_space<vmem>>) attributes {dimension_semantics = [#tpu.dimension_semantics<arbitrary>], iteration_bounds = array<i64: 1>, scalar_prefetch = 0 : i64, scratch_operands = 0 : i64, tpu.core_type = #tpu.core_type<tc>, window_params = [{pipeline_mode = #tpu.pipeline_mode<synchronous>, transform_indices = @transform_0, window_bounds = array<i64: 16, 32>}, {pipeline_mode = #tpu.pipeline_mode<synchronous>, transform_indices = @transform_1, window_bounds = array<i64: 32, 32>}, {pipeline_mode = #tpu.pipeline_mode<synchronous>, transform_indices = @transform_2, window_bounds = array<i64: 16, 16>}, {pipeline_mode = #tpu.pipeline_mode<synchronous>, transform_indices = @transform_3, window_bounds = array<i64: 16, 32>}, {pipeline_mode = #tpu.pipeline_mode<synchronous>, transform_indices = @transform_4, window_bounds = array<i64: 3, 32>}, {pipeline_mode = #tpu.pipeline_mode<synchronous>, transform_indices = @transform_5, window_bounds = array<i64: 3, 32>}, {pipeline_mode = #tpu.pipeline_mode<synchronous>, transform_indices = @transform_6, window_bounds = array<i64: 4, 32, 32>}, {pipeline_mode = #tpu.pipeline_mode<synchronous>, transform_indices = @transform_7, window_bounds = array<i64: 4, 32>}, {pipeline_mode = #tpu.pipeline_mode<synchronous>, transform_indices = @transform_8, window_bounds = array<i64: 4, 32, 32>}, {pipeline_mode = #tpu.pipeline_mode<synchronous>, transform_indices = @transform_9, window_bounds = array<i64: 4, 32>}, {pipeline_mode = #tpu.pipeline_mode<synchronous>, transform_indices = @transform_10, window_bounds = array<i64: 32, 64>}, {pipeline_mode = #tpu.pipeline_mode<synchronous>, transform_indices = @transform_11, window_bounds = array<i64: 1, 64>}, {pipeline_mode = #tpu.pipeline_mode<synchronous>, transform_indices = @transform_12, window_bounds = array<i64: 64, 32>}, {pipeline_mode = #tpu.pipeline_mode<synchronous>, transform_indices = @transform_13, window_bounds = array<i64: 1, 32>}, {pipeline_mode = #tpu.pipeline_mode<synchronous>, transform_indices = @transform_14, window_bounds = array<i64: 16, 32>}, {pipeline_mode = #tpu.pipeline_mode<synchronous>, transform_indices = @transform_15, window_bounds = array<i64: 16, 16>}, {pipeline_mode = #tpu.pipeline_mode<synchronous>, transform_indices = @transform_16, window_bounds = array<i64: 16, 32>}]} {
    %c0 = arith.constant 0 : index
    %c0_0 = arith.constant 0 : index
    %0 = vector.load %arg1[%c0, %c0_0] : memref<16x32xf32, #tpu.memory_space<vmem>>, vector<16x32xf32>
    %c0_1 = arith.constant 0 : index
    %c0_2 = arith.constant 0 : index
    %1 = vector.load %arg2[%c0_1, %c0_2] : memref<32x32xf32, #tpu.memory_space<vmem>>, vector<32x32xf32>
    %c0_3 = arith.constant 0 : index
    %c0_4 = arith.constant 0 : index
    %2 = vector.load %arg3[%c0_3, %c0_4] : memref<16x16xf32, #tpu.memory_space<vmem>>, vector<16x16xf32>
    %cst = arith.constant 0.000000e+00 : f32
    %3 = vector.broadcast %cst : f32 to vector<16x16xf32>
    %4 = arith.cmpf ogt, %2, %3 : vector<16x16xf32>
    %c0_5 = arith.constant 0 : index
    %c0_6 = arith.constant 0 : index
    %5 = vector.load %arg4[%c0_5, %c0_6] : memref<16x32xf32, #tpu.memory_space<vmem>>, vector<16x32xf32>
    %cst_7 = arith.constant 0.000000e+00 : f32
    %6 = vector.broadcast %cst_7 : f32 to vector<16x32xf32>
    %7 = arith.cmpf ogt, %5, %6 : vector<16x32xf32>
    %c0_8 = arith.constant 0 : index
    %c0_9 = arith.constant 0 : index
    %8 = vector.load %arg5[%c0_8, %c0_9] : memref<3x32xf32, #tpu.memory_space<vmem>>, vector<1x32xf32>
    %c0_10 = arith.constant 0 : index
    %c0_11 = arith.constant 0 : index
    %9 = vector.load %arg6[%c0_10, %c0_11] : memref<3x32xf32, #tpu.memory_space<vmem>>, vector<1x32xf32>
    %cst_12 = arith.constant dense<0.000000e+00> : vector<16xf32>
    %10 = vector.multi_reduction <add>, %0, %cst_12 [1] : vector<16x32xf32> to vector<16xf32>
    %11 = vector.shape_cast %10 : vector<16xf32> to vector<16x1xf32>
    %cst_13 = arith.constant 3.200000e+01 : f32
    %12 = vector.broadcast %cst_13 : f32 to vector<16x1xf32>
    %13 = arith.divf %11, %12 : vector<16x1xf32>
    %14 = vector.broadcast %13 : vector<16x1xf32> to vector<16x32xf32>
    %15 = arith.subf %0, %14 : vector<16x32xf32>
    %16 = arith.mulf %15, %15 : vector<16x32xf32>
    %cst_14 = arith.constant dense<0.000000e+00> : vector<16xf32>
    %17 = vector.multi_reduction <add>, %16, %cst_14 [1] : vector<16x32xf32> to vector<16xf32>
    %18 = vector.shape_cast %17 : vector<16xf32> to vector<16x1xf32>
    %cst_15 = arith.constant 3.200000e+01 : f32
    %19 = vector.broadcast %cst_15 : f32 to vector<16x1xf32>
    %20 = arith.divf %18, %19 : vector<16x1xf32>
    %cst_16 = arith.constant 9.99999997E-7 : f32
    %21 = vector.broadcast %cst_16 : f32 to vector<16x1xf32>
    %22 = arith.addf %20, %21 : vector<16x1xf32>
    %23 = math.rsqrt %22 : vector<16x1xf32>
    %24 = vector.broadcast %23 : vector<16x1xf32> to vector<16x32xf32>
    %25 = arith.mulf %15, %24 : vector<16x32xf32>
    %26 = vector.broadcast %8 : vector<1x32xf32> to vector<16x32xf32>
    %27 = arith.mulf %25, %26 : vector<16x32xf32>
    %28 = vector.broadcast %9 : vector<1x32xf32> to vector<16x32xf32>
    %29 = arith.addf %27, %28 : vector<16x32xf32>
    %c0_17 = arith.constant 0 : index
    %c0_18 = arith.constant 0 : index
    %30 = vector.load %arg17[%c0_17, %c0_18] : memref<16x32xf32, #tpu.memory_space<vmem>>, vector<16x32xf32>
    tpu.vector_store %arg17[%c0_17, %c0_18], %29 {strides = array<i32>} : memref<16x32xf32, #tpu.memory_space<vmem>>, vector<16x32xf32>,
    %c0_19 = arith.constant 0 : index
    %c0_20 = arith.constant 0 : index
    %c0_21 = arith.constant 0 : index
    %31 = vector.load %arg7[%c0_19, %c0_20, %c0_21] : memref<4x32x32xf32, #tpu.memory_space<vmem>>, vector<1x32x32xf32>
    %32 = vector.shape_cast %31 : vector<1x32x32xf32> to vector<32x32xf32>
    %cst_22 = arith.constant dense<0.000000e+00> : vector<16x32xf32>
    %33 = tpu.matmul %29, %32, %cst_22 {dimension_numbers = #tpu.dot_dimension_numbers<[1], [0], [0], [1], [0, 0, 1, 1], [], []>} : vector<16x32xf32>, vector<32x32xf32>, vector<16x32xf32> -> vector<16x32xf32>
    %c0_23 = arith.constant 0 : index
    %c0_24 = arith.constant 0 : index
    %34 = vector.load %arg8[%c0_23, %c0_24] : memref<4x32xf32, #tpu.memory_space<vmem>>, vector<1x32xf32>
    %35 = vector.broadcast %34 : vector<1x32xf32> to vector<16x32xf32>
    %36 = arith.addf %33, %35 : vector<16x32xf32>
    %c1 = arith.constant 1 : index
    %c0_25 = arith.constant 0 : index
    %c0_26 = arith.constant 0 : index
    %37 = vector.load %arg7[%c1, %c0_25, %c0_26] : memref<4x32x32xf32, #tpu.memory_space<vmem>>, vector<1x32x32xf32>
    %38 = vector.shape_cast %37 : vector<1x32x32xf32> to vector<32x32xf32>
    %cst_27 = arith.constant dense<0.000000e+00> : vector<16x32xf32>
    %39 = tpu.matmul %29, %38, %cst_27 {dimension_numbers = #tpu.dot_dimension_numbers<[1], [0], [0], [1], [0, 0, 1, 1], [], []>} : vector<16x32xf32>, vector<32x32xf32>, vector<16x32xf32> -> vector<16x32xf32>
    %c1_28 = arith.constant 1 : index
    %c0_29 = arith.constant 0 : index
    %40 = vector.load %arg8[%c1_28, %c0_29] : memref<4x32xf32, #tpu.memory_space<vmem>>, vector<1x32xf32>
    %41 = vector.broadcast %40 : vector<1x32xf32> to vector<16x32xf32>
    %42 = arith.addf %39, %41 : vector<16x32xf32>
    %c2 = arith.constant 2 : index
    %c0_30 = arith.constant 0 : index
    %c0_31 = arith.constant 0 : index
    %43 = vector.load %arg7[%c2, %c0_30, %c0_31] : memref<4x32x32xf32, #tpu.memory_space<vmem>>, vector<1x32x32xf32>
    %44 = vector.shape_cast %43 : vector<1x32x32xf32> to vector<32x32xf32>
    %cst_32 = arith.constant dense<0.000000e+00> : vector<16x32xf32>
    %45 = tpu.matmul %29, %44, %cst_32 {dimension_numbers = #tpu.dot_dimension_numbers<[1], [0], [0], [1], [0, 0, 1, 1], [], []>} : vector<16x32xf32>, vector<32x32xf32>, vector<16x32xf32> -> vector<16x32xf32>
    %c2_33 = arith.constant 2 : index
    %c0_34 = arith.constant 0 : index
    %46 = vector.load %arg8[%c2_33, %c0_34] : memref<4x32xf32, #tpu.memory_space<vmem>>, vector<1x32xf32>
    %47 = vector.broadcast %46 : vector<1x32xf32> to vector<16x32xf32>
    %48 = arith.addf %45, %47 : vector<16x32xf32>
    %c3 = arith.constant 3 : index
    %c0_35 = arith.constant 0 : index
    %c0_36 = arith.constant 0 : index
    %49 = vector.load %arg7[%c3, %c0_35, %c0_36] : memref<4x32x32xf32, #tpu.memory_space<vmem>>, vector<1x32x32xf32>
    %50 = vector.shape_cast %49 : vector<1x32x32xf32> to vector<32x32xf32>
    %cst_37 = arith.constant 0.000000e+00 : f32
    %51 = vector.broadcast %cst_37 : f32 to vector<16x32xf32>
    %c3_38 = arith.constant 3 : index
    %c0_39 = arith.constant 0 : index
    %52 = vector.load %arg8[%c3_38, %c0_39] : memref<4x32xf32, #tpu.memory_space<vmem>>, vector<1x32xf32>
    %53 = vector.broadcast %52 : vector<1x32xf32> to vector<16x32xf32>
    %54 = arith.addf %51, %53 : vector<16x32xf32>
    %55 = vector.extract_strided_slice %36 {offsets = [0, 0], sizes = [16, 8], strides = [1, 1]} : vector<16x32xf32> to vector<16x8xf32>
    %cst_40 = arith.constant 0.353553385 : f32
    %56 = vector.broadcast %cst_40 : f32 to vector<16x8xf32>
    %57 = arith.mulf %55, %56 : vector<16x8xf32>
    %58 = vector.extract_strided_slice %42 {offsets = [0, 0], sizes = [16, 8], strides = [1, 1]} : vector<16x32xf32> to vector<16x8xf32>
    %cst_41 = arith.constant dense<0.000000e+00> : vector<16x16xf32>
    %59 = tpu.matmul %57, %58, %cst_41 {dimension_numbers = #tpu.dot_dimension_numbers<[1], [1], [0], [0], [0, 0, 1, 0], [], []>} : vector<16x8xf32>, vector<16x8xf32>, vector<16x16xf32> -> vector<16x16xf32>
    %cst_42 = arith.constant -9.99999984E+17 : f32
    %60 = vector.broadcast %cst_42 : f32 to vector<16x16xf32>
    %61 = arith.select %4, %60, %59 : vector<16x16xi1>, vector<16x16xf32>
    %cst_43 = arith.constant dense<0xFF800000> : vector<16xf32>
    %62 = vector.multi_reduction <maximumf>, %61, %cst_43 [1] : vector<16x16xf32> to vector<16xf32>
    %63 = vector.shape_cast %62 : vector<16xf32> to vector<16x1xf32>
    %64 = vector.broadcast %63 : vector<16x1xf32> to vector<16x16xf32>
    %65 = arith.subf %61, %64 : vector<16x16xf32>
    %66 = math.exp %65 : vector<16x16xf32>
    %cst_44 = arith.constant dense<0.000000e+00> : vector<16xf32>
    %67 = vector.multi_reduction <add>, %66, %cst_44 [1] : vector<16x16xf32> to vector<16xf32>
    %68 = vector.shape_cast %67 : vector<16xf32> to vector<16x1xf32>
    %69 = vector.broadcast %68 : vector<16x1xf32> to vector<16x16xf32>
    %70 = arith.divf %66, %69 : vector<16x16xf32>
    %71 = vector.extract_strided_slice %48 {offsets = [0, 0], sizes = [16, 8], strides = [1, 1]} : vector<16x32xf32> to vector<16x8xf32>
    %cst_45 = arith.constant dense<0.000000e+00> : vector<16x8xf32>
    %72 = tpu.matmul %70, %71, %cst_45 {dimension_numbers = #tpu.dot_dimension_numbers<[1], [0], [0], [1], [0, 0, 1, 1], [], []>} : vector<16x16xf32>, vector<16x8xf32>, vector<16x8xf32> -> vector<16x8xf32>
    %73 = vector.extract_strided_slice %50 {offsets = [0, 0], sizes = [8, 32], strides = [1, 1]} : vector<32x32xf32> to vector<8x32xf32>
    %cst_46 = arith.constant dense<0.000000e+00> : vector<16x32xf32>
    %74 = tpu.matmul %72, %73, %cst_46 {dimension_numbers = #tpu.dot_dimension_numbers<[1], [0], [0], [1], [0, 0, 1, 1], [], []>} : vector<16x8xf32>, vector<8x32xf32>, vector<16x32xf32> -> vector<16x32xf32>
    %75 = arith.addf %54, %74 : vector<16x32xf32>
    %76 = vector.extract_strided_slice %36 {offsets = [0, 8], sizes = [16, 8], strides = [1, 1]} : vector<16x32xf32> to vector<16x8xf32>
    %cst_47 = arith.constant 0.353553385 : f32
    %77 = vector.broadcast %cst_47 : f32 to vector<16x8xf32>
    %78 = arith.mulf %76, %77 : vector<16x8xf32>
    %79 = vector.extract_strided_slice %42 {offsets = [0, 8], sizes = [16, 8], strides = [1, 1]} : vector<16x32xf32> to vector<16x8xf32>
    %cst_48 = arith.constant dense<0.000000e+00> : vector<16x16xf32>
    %80 = tpu.matmul %78, %79, %cst_48 {dimension_numbers = #tpu.dot_dimension_numbers<[1], [1], [0], [0], [0, 0, 1, 0], [], []>} : vector<16x8xf32>, vector<16x8xf32>, vector<16x16xf32> -> vector<16x16xf32>
    %cst_49 = arith.constant -9.99999984E+17 : f32
    %81 = vector.broadcast %cst_49 : f32 to vector<16x16xf32>
    %82 = arith.select %4, %81, %80 : vector<16x16xi1>, vector<16x16xf32>
    %cst_50 = arith.constant dense<0xFF800000> : vector<16xf32>
    %83 = vector.multi_reduction <maximumf>, %82, %cst_50 [1] : vector<16x16xf32> to vector<16xf32>
    %84 = vector.shape_cast %83 : vector<16xf32> to vector<16x1xf32>
    %85 = vector.broadcast %84 : vector<16x1xf32> to vector<16x16xf32>
    %86 = arith.subf %82, %85 : vector<16x16xf32>
    %87 = math.exp %86 : vector<16x16xf32>
    %cst_51 = arith.constant dense<0.000000e+00> : vector<16xf32>
    %88 = vector.multi_reduction <add>, %87, %cst_51 [1] : vector<16x16xf32> to vector<16xf32>
    %89 = vector.shape_cast %88 : vector<16xf32> to vector<16x1xf32>
    %90 = vector.broadcast %89 : vector<16x1xf32> to vector<16x16xf32>
    %91 = arith.divf %87, %90 : vector<16x16xf32>
    %92 = vector.extract_strided_slice %48 {offsets = [0, 8], sizes = [16, 8], strides = [1, 1]} : vector<16x32xf32> to vector<16x8xf32>
    %cst_52 = arith.constant dense<0.000000e+00> : vector<16x8xf32>
    %93 = tpu.matmul %91, %92, %cst_52 {dimension_numbers = #tpu.dot_dimension_numbers<[1], [0], [0], [1], [0, 0, 1, 1], [], []>} : vector<16x16xf32>, vector<16x8xf32>, vector<16x8xf32> -> vector<16x8xf32>
    %94 = vector.extract_strided_slice %50 {offsets = [8, 0], sizes = [8, 32], strides = [1, 1]} : vector<32x32xf32> to vector<8x32xf32>
    %cst_53 = arith.constant dense<0.000000e+00> : vector<16x32xf32>
    %95 = tpu.matmul %93, %94, %cst_53 {dimension_numbers = #tpu.dot_dimension_numbers<[1], [0], [0], [1], [0, 0, 1, 1], [], []>} : vector<16x8xf32>, vector<8x32xf32>, vector<16x32xf32> -> vector<16x32xf32>
    %96 = arith.addf %75, %95 : vector<16x32xf32>
    %97 = vector.extract_strided_slice %36 {offsets = [0, 16], sizes = [16, 8], strides = [1, 1]} : vector<16x32xf32> to vector<16x8xf32>
    %cst_54 = arith.constant 0.353553385 : f32
    %98 = vector.broadcast %cst_54 : f32 to vector<16x8xf32>
    %99 = arith.mulf %97, %98 : vector<16x8xf32>
    %100 = vector.extract_strided_slice %42 {offsets = [0, 16], sizes = [16, 8], strides = [1, 1]} : vector<16x32xf32> to vector<16x8xf32>
    %cst_55 = arith.constant dense<0.000000e+00> : vector<16x16xf32>
    %101 = tpu.matmul %99, %100, %cst_55 {dimension_numbers = #tpu.dot_dimension_numbers<[1], [1], [0], [0], [0, 0, 1, 0], [], []>} : vector<16x8xf32>, vector<16x8xf32>, vector<16x16xf32> -> vector<16x16xf32>
    %cst_56 = arith.constant -9.99999984E+17 : f32
    %102 = vector.broadcast %cst_56 : f32 to vector<16x16xf32>
    %103 = arith.select %4, %102, %101 : vector<16x16xi1>, vector<16x16xf32>
    %cst_57 = arith.constant dense<0xFF800000> : vector<16xf32>
    %104 = vector.multi_reduction <maximumf>, %103, %cst_57 [1] : vector<16x16xf32> to vector<16xf32>
    %105 = vector.shape_cast %104 : vector<16xf32> to vector<16x1xf32>
    %106 = vector.broadcast %105 : vector<16x1xf32> to vector<16x16xf32>
    %107 = arith.subf %103, %106 : vector<16x16xf32>
    %108 = math.exp %107 : vector<16x16xf32>
    %cst_58 = arith.constant dense<0.000000e+00> : vector<16xf32>
    %109 = vector.multi_reduction <add>, %108, %cst_58 [1] : vector<16x16xf32> to vector<16xf32>
    %110 = vector.shape_cast %109 : vector<16xf32> to vector<16x1xf32>
    %111 = vector.broadcast %110 : vector<16x1xf32> to vector<16x16xf32>
    %112 = arith.divf %108, %111 : vector<16x16xf32>
    %113 = vector.extract_strided_slice %48 {offsets = [0, 16], sizes = [16, 8], strides = [1, 1]} : vector<16x32xf32> to vector<16x8xf32>
    %cst_59 = arith.constant dense<0.000000e+00> : vector<16x8xf32>
    %114 = tpu.matmul %112, %113, %cst_59 {dimension_numbers = #tpu.dot_dimension_numbers<[1], [0], [0], [1], [0, 0, 1, 1], [], []>} : vector<16x16xf32>, vector<16x8xf32>, vector<16x8xf32> -> vector<16x8xf32>
    %115 = vector.extract_strided_slice %50 {offsets = [16, 0], sizes = [8, 32], strides = [1, 1]} : vector<32x32xf32> to vector<8x32xf32>
    %cst_60 = arith.constant dense<0.000000e+00> : vector<16x32xf32>
    %116 = tpu.matmul %114, %115, %cst_60 {dimension_numbers = #tpu.dot_dimension_numbers<[1], [0], [0], [1], [0, 0, 1, 1], [], []>} : vector<16x8xf32>, vector<8x32xf32>, vector<16x32xf32> -> vector<16x32xf32>
    %117 = arith.addf %96, %116 : vector<16x32xf32>
    %118 = vector.extract_strided_slice %36 {offsets = [0, 24], sizes = [16, 8], strides = [1, 1]} : vector<16x32xf32> to vector<16x8xf32>
    %cst_61 = arith.constant 0.353553385 : f32
    %119 = vector.broadcast %cst_61 : f32 to vector<16x8xf32>
    %120 = arith.mulf %118, %119 : vector<16x8xf32>
    %121 = vector.extract_strided_slice %42 {offsets = [0, 24], sizes = [16, 8], strides = [1, 1]} : vector<16x32xf32> to vector<16x8xf32>
    %cst_62 = arith.constant dense<0.000000e+00> : vector<16x16xf32>
    %122 = tpu.matmul %120, %121, %cst_62 {dimension_numbers = #tpu.dot_dimension_numbers<[1], [1], [0], [0], [0, 0, 1, 0], [], []>} : vector<16x8xf32>, vector<16x8xf32>, vector<16x16xf32> -> vector<16x16xf32>
    %cst_63 = arith.constant -9.99999984E+17 : f32
    %123 = vector.broadcast %cst_63 : f32 to vector<16x16xf32>
    %124 = arith.select %4, %123, %122 : vector<16x16xi1>, vector<16x16xf32>
    %cst_64 = arith.constant dense<0xFF800000> : vector<16xf32>
    %125 = vector.multi_reduction <maximumf>, %124, %cst_64 [1] : vector<16x16xf32> to vector<16xf32>
    %126 = vector.shape_cast %125 : vector<16xf32> to vector<16x1xf32>
    %127 = vector.broadcast %126 : vector<16x1xf32> to vector<16x16xf32>
    %128 = arith.subf %124, %127 : vector<16x16xf32>
    %129 = math.exp %128 : vector<16x16xf32>
    %cst_65 = arith.constant dense<0.000000e+00> : vector<16xf32>
    %130 = vector.multi_reduction <add>, %129, %cst_65 [1] : vector<16x16xf32> to vector<16xf32>
    %131 = vector.shape_cast %130 : vector<16xf32> to vector<16x1xf32>
    %132 = vector.broadcast %131 : vector<16x1xf32> to vector<16x16xf32>
    %133 = arith.divf %129, %132 : vector<16x16xf32>
    %134 = vector.extract_strided_slice %48 {offsets = [0, 24], sizes = [16, 8], strides = [1, 1]} : vector<16x32xf32> to vector<16x8xf32>
    %cst_66 = arith.constant dense<0.000000e+00> : vector<16x8xf32>
    %135 = tpu.matmul %133, %134, %cst_66 {dimension_numbers = #tpu.dot_dimension_numbers<[1], [0], [0], [1], [0, 0, 1, 1], [], []>} : vector<16x16xf32>, vector<16x8xf32>, vector<16x8xf32> -> vector<16x8xf32>
    %136 = vector.extract_strided_slice %50 {offsets = [24, 0], sizes = [8, 32], strides = [1, 1]} : vector<32x32xf32> to vector<8x32xf32>
    %cst_67 = arith.constant dense<0.000000e+00> : vector<16x32xf32>
    %137 = tpu.matmul %135, %136, %cst_67 {dimension_numbers = #tpu.dot_dimension_numbers<[1], [0], [0], [1], [0, 0, 1, 1], [], []>} : vector<16x8xf32>, vector<8x32xf32>, vector<16x32xf32> -> vector<16x32xf32>
    %138 = arith.addf %117, %137 : vector<16x32xf32>
    %139 = arith.addf %138, %0 : vector<16x32xf32>
    %c1_68 = arith.constant 1 : index
    %c0_69 = arith.constant 0 : index
    %140 = vector.load %arg5[%c1_68, %c0_69] : memref<3x32xf32, #tpu.memory_space<vmem>>, vector<1x32xf32>
    %c1_70 = arith.constant 1 : index
    %c0_71 = arith.constant 0 : index
    %141 = vector.load %arg6[%c1_70, %c0_71] : memref<3x32xf32, #tpu.memory_space<vmem>>, vector<1x32xf32>
    %cst_72 = arith.constant dense<0.000000e+00> : vector<16xf32>
    %142 = vector.multi_reduction <add>, %139, %cst_72 [1] : vector<16x32xf32> to vector<16xf32>
    %143 = vector.shape_cast %142 : vector<16xf32> to vector<16x1xf32>
    %cst_73 = arith.constant 3.200000e+01 : f32
    %144 = vector.broadcast %cst_73 : f32 to vector<16x1xf32>
    %145 = arith.divf %143, %144 : vector<16x1xf32>
    %146 = vector.broadcast %145 : vector<16x1xf32> to vector<16x32xf32>
    %147 = arith.subf %139, %146 : vector<16x32xf32>
    %148 = arith.mulf %147, %147 : vector<16x32xf32>
    %cst_74 = arith.constant dense<0.000000e+00> : vector<16xf32>
    %149 = vector.multi_reduction <add>, %148, %cst_74 [1] : vector<16x32xf32> to vector<16xf32>
    %150 = vector.shape_cast %149 : vector<16xf32> to vector<16x1xf32>
    %cst_75 = arith.constant 3.200000e+01 : f32
    %151 = vector.broadcast %cst_75 : f32 to vector<16x1xf32>
    %152 = arith.divf %150, %151 : vector<16x1xf32>
    %cst_76 = arith.constant 9.99999997E-7 : f32
    %153 = vector.broadcast %cst_76 : f32 to vector<16x1xf32>
    %154 = arith.addf %152, %153 : vector<16x1xf32>
    %155 = math.rsqrt %154 : vector<16x1xf32>
    %156 = vector.broadcast %155 : vector<16x1xf32> to vector<16x32xf32>
    %157 = arith.mulf %147, %156 : vector<16x32xf32>
    %158 = vector.broadcast %140 : vector<1x32xf32> to vector<16x32xf32>
    %159 = arith.mulf %157, %158 : vector<16x32xf32>
    %160 = vector.broadcast %141 : vector<1x32xf32> to vector<16x32xf32>
    %161 = arith.addf %159, %160 : vector<16x32xf32>
    %c0_77 = arith.constant 0 : index
    %c0_78 = arith.constant 0 : index
    %c0_79 = arith.constant 0 : index
    %162 = vector.load %arg9[%c0_77, %c0_78, %c0_79] : memref<4x32x32xf32, #tpu.memory_space<vmem>>, vector<1x32x32xf32>
    %163 = vector.shape_cast %162 : vector<1x32x32xf32> to vector<32x32xf32>
    %cst_80 = arith.constant dense<0.000000e+00> : vector<16x32xf32>
    %164 = tpu.matmul %161, %163, %cst_80 {dimension_numbers = #tpu.dot_dimension_numbers<[1], [0], [0], [1], [0, 0, 1, 1], [], []>} : vector<16x32xf32>, vector<32x32xf32>, vector<16x32xf32> -> vector<16x32xf32>
    %c0_81 = arith.constant 0 : index
    %c0_82 = arith.constant 0 : index
    %165 = vector.load %arg10[%c0_81, %c0_82] : memref<4x32xf32, #tpu.memory_space<vmem>>, vector<1x32xf32>
    %166 = vector.broadcast %165 : vector<1x32xf32> to vector<16x32xf32>
    %167 = arith.addf %164, %166 : vector<16x32xf32>
    %c1_83 = arith.constant 1 : index
    %c0_84 = arith.constant 0 : index
    %c0_85 = arith.constant 0 : index
    %168 = vector.load %arg9[%c1_83, %c0_84, %c0_85] : memref<4x32x32xf32, #tpu.memory_space<vmem>>, vector<1x32x32xf32>
    %169 = vector.shape_cast %168 : vector<1x32x32xf32> to vector<32x32xf32>
    %cst_86 = arith.constant dense<0.000000e+00> : vector<32x32xf32>
    %170 = tpu.matmul %1, %169, %cst_86 {dimension_numbers = #tpu.dot_dimension_numbers<[1], [0], [0], [1], [0, 0, 1, 1], [], []>} : vector<32x32xf32>, vector<32x32xf32>, vector<32x32xf32> -> vector<32x32xf32>
    %c1_87 = arith.constant 1 : index
    %c0_88 = arith.constant 0 : index
    %171 = vector.load %arg10[%c1_87, %c0_88] : memref<4x32xf32, #tpu.memory_space<vmem>>, vector<1x32xf32>
    %172 = vector.broadcast %171 : vector<1x32xf32> to vector<32x32xf32>
    %173 = arith.addf %170, %172 : vector<32x32xf32>
    %c2_89 = arith.constant 2 : index
    %c0_90 = arith.constant 0 : index
    %c0_91 = arith.constant 0 : index
    %174 = vector.load %arg9[%c2_89, %c0_90, %c0_91] : memref<4x32x32xf32, #tpu.memory_space<vmem>>, vector<1x32x32xf32>
    %175 = vector.shape_cast %174 : vector<1x32x32xf32> to vector<32x32xf32>
    %cst_92 = arith.constant dense<0.000000e+00> : vector<32x32xf32>
    %176 = tpu.matmul %1, %175, %cst_92 {dimension_numbers = #tpu.dot_dimension_numbers<[1], [0], [0], [1], [0, 0, 1, 1], [], []>} : vector<32x32xf32>, vector<32x32xf32>, vector<32x32xf32> -> vector<32x32xf32>
    %c2_93 = arith.constant 2 : index
    %c0_94 = arith.constant 0 : index
    %177 = vector.load %arg10[%c2_93, %c0_94] : memref<4x32xf32, #tpu.memory_space<vmem>>, vector<1x32xf32>
    %178 = vector.broadcast %177 : vector<1x32xf32> to vector<32x32xf32>
    %179 = arith.addf %176, %178 : vector<32x32xf32>
    %c3_95 = arith.constant 3 : index
    %c0_96 = arith.constant 0 : index
    %c0_97 = arith.constant 0 : index
    %180 = vector.load %arg9[%c3_95, %c0_96, %c0_97] : memref<4x32x32xf32, #tpu.memory_space<vmem>>, vector<1x32x32xf32>
    %181 = vector.shape_cast %180 : vector<1x32x32xf32> to vector<32x32xf32>
    %cst_98 = arith.constant 0.000000e+00 : f32
    %182 = vector.broadcast %cst_98 : f32 to vector<16x32xf32>
    %c3_99 = arith.constant 3 : index
    %c0_100 = arith.constant 0 : index
    %183 = vector.load %arg10[%c3_99, %c0_100] : memref<4x32xf32, #tpu.memory_space<vmem>>, vector<1x32xf32>
    %184 = vector.broadcast %183 : vector<1x32xf32> to vector<16x32xf32>
    %185 = arith.addf %182, %184 : vector<16x32xf32>
    %186 = vector.extract_strided_slice %167 {offsets = [0, 0], sizes = [16, 8], strides = [1, 1]} : vector<16x32xf32> to vector<16x8xf32>
    %cst_101 = arith.constant 0.353553385 : f32
    %187 = vector.broadcast %cst_101 : f32 to vector<16x8xf32>
    %188 = arith.mulf %186, %187 : vector<16x8xf32>
    %189 = vector.extract_strided_slice %173 {offsets = [0, 0], sizes = [32, 8], strides = [1, 1]} : vector<32x32xf32> to vector<32x8xf32>
    %cst_102 = arith.constant dense<0.000000e+00> : vector<16x32xf32>
    %190 = tpu.matmul %188, %189, %cst_102 {dimension_numbers = #tpu.dot_dimension_numbers<[1], [1], [0], [0], [0, 0, 1, 0], [], []>} : vector<16x8xf32>, vector<32x8xf32>, vector<16x32xf32> -> vector<16x32xf32>
    %cst_103 = arith.constant -9.99999984E+17 : f32
    %191 = vector.broadcast %cst_103 : f32 to vector<16x32xf32>
    %192 = arith.select %7, %191, %190 : vector<16x32xi1>, vector<16x32xf32>
    %cst_104 = arith.constant dense<0xFF800000> : vector<16xf32>
    %193 = vector.multi_reduction <maximumf>, %192, %cst_104 [1] : vector<16x32xf32> to vector<16xf32>
    %194 = vector.shape_cast %193 : vector<16xf32> to vector<16x1xf32>
    %195 = vector.broadcast %194 : vector<16x1xf32> to vector<16x32xf32>
    %196 = arith.subf %192, %195 : vector<16x32xf32>
    %197 = math.exp %196 : vector<16x32xf32>
    %cst_105 = arith.constant dense<0.000000e+00> : vector<16xf32>
    %198 = vector.multi_reduction <add>, %197, %cst_105 [1] : vector<16x32xf32> to vector<16xf32>
    %199 = vector.shape_cast %198 : vector<16xf32> to vector<16x1xf32>
    %200 = vector.broadcast %199 : vector<16x1xf32> to vector<16x32xf32>
    %201 = arith.divf %197, %200 : vector<16x32xf32>
    %202 = vector.extract_strided_slice %179 {offsets = [0, 0], sizes = [32, 8], strides = [1, 1]} : vector<32x32xf32> to vector<32x8xf32>
    %cst_106 = arith.constant dense<0.000000e+00> : vector<16x8xf32>
    %203 = tpu.matmul %201, %202, %cst_106 {dimension_numbers = #tpu.dot_dimension_numbers<[1], [0], [0], [1], [0, 0, 1, 1], [], []>} : vector<16x32xf32>, vector<32x8xf32>, vector<16x8xf32> -> vector<16x8xf32>
    %204 = vector.extract_strided_slice %181 {offsets = [0, 0], sizes = [8, 32], strides = [1, 1]} : vector<32x32xf32> to vector<8x32xf32>
    %cst_107 = arith.constant dense<0.000000e+00> : vector<16x32xf32>
    %205 = tpu.matmul %203, %204, %cst_107 {dimension_numbers = #tpu.dot_dimension_numbers<[1], [0], [0], [1], [0, 0, 1, 1], [], []>} : vector<16x8xf32>, vector<8x32xf32>, vector<16x32xf32> -> vector<16x32xf32>
    %206 = arith.addf %185, %205 : vector<16x32xf32>
    %207 = vector.extract_strided_slice %167 {offsets = [0, 8], sizes = [16, 8], strides = [1, 1]} : vector<16x32xf32> to vector<16x8xf32>
    %cst_108 = arith.constant 0.353553385 : f32
    %208 = vector.broadcast %cst_108 : f32 to vector<16x8xf32>
    %209 = arith.mulf %207, %208 : vector<16x8xf32>
    %210 = vector.extract_strided_slice %173 {offsets = [0, 8], sizes = [32, 8], strides = [1, 1]} : vector<32x32xf32> to vector<32x8xf32>
    %cst_109 = arith.constant dense<0.000000e+00> : vector<16x32xf32>
    %211 = tpu.matmul %209, %210, %cst_109 {dimension_numbers = #tpu.dot_dimension_numbers<[1], [1], [0], [0], [0, 0, 1, 0], [], []>} : vector<16x8xf32>, vector<32x8xf32>, vector<16x32xf32> -> vector<16x32xf32>
    %cst_110 = arith.constant -9.99999984E+17 : f32
    %212 = vector.broadcast %cst_110 : f32 to vector<16x32xf32>
    %213 = arith.select %7, %212, %211 : vector<16x32xi1>, vector<16x32xf32>
    %cst_111 = arith.constant dense<0xFF800000> : vector<16xf32>
    %214 = vector.multi_reduction <maximumf>, %213, %cst_111 [1] : vector<16x32xf32> to vector<16xf32>
    %215 = vector.shape_cast %214 : vector<16xf32> to vector<16x1xf32>
    %216 = vector.broadcast %215 : vector<16x1xf32> to vector<16x32xf32>
    %217 = arith.subf %213, %216 : vector<16x32xf32>
    %218 = math.exp %217 : vector<16x32xf32>
    %cst_112 = arith.constant dense<0.000000e+00> : vector<16xf32>
    %219 = vector.multi_reduction <add>, %218, %cst_112 [1] : vector<16x32xf32> to vector<16xf32>
    %220 = vector.shape_cast %219 : vector<16xf32> to vector<16x1xf32>
    %221 = vector.broadcast %220 : vector<16x1xf32> to vector<16x32xf32>
    %222 = arith.divf %218, %221 : vector<16x32xf32>
    %223 = vector.extract_strided_slice %179 {offsets = [0, 8], sizes = [32, 8], strides = [1, 1]} : vector<32x32xf32> to vector<32x8xf32>
    %cst_113 = arith.constant dense<0.000000e+00> : vector<16x8xf32>
    %224 = tpu.matmul %222, %223, %cst_113 {dimension_numbers = #tpu.dot_dimension_numbers<[1], [0], [0], [1], [0, 0, 1, 1], [], []>} : vector<16x32xf32>, vector<32x8xf32>, vector<16x8xf32> -> vector<16x8xf32>
    %225 = vector.extract_strided_slice %181 {offsets = [8, 0], sizes = [8, 32], strides = [1, 1]} : vector<32x32xf32> to vector<8x32xf32>
    %cst_114 = arith.constant dense<0.000000e+00> : vector<16x32xf32>
    %226 = tpu.matmul %224, %225, %cst_114 {dimension_numbers = #tpu.dot_dimension_numbers<[1], [0], [0], [1], [0, 0, 1, 1], [], []>} : vector<16x8xf32>, vector<8x32xf32>, vector<16x32xf32> -> vector<16x32xf32>
    %227 = arith.addf %206, %226 : vector<16x32xf32>
    %228 = vector.extract_strided_slice %167 {offsets = [0, 16], sizes = [16, 8], strides = [1, 1]} : vector<16x32xf32> to vector<16x8xf32>
    %cst_115 = arith.constant 0.353553385 : f32
    %229 = vector.broadcast %cst_115 : f32 to vector<16x8xf32>
    %230 = arith.mulf %228, %229 : vector<16x8xf32>
    %231 = vector.extract_strided_slice %173 {offsets = [0, 16], sizes = [32, 8], strides = [1, 1]} : vector<32x32xf32> to vector<32x8xf32>
    %cst_116 = arith.constant dense<0.000000e+00> : vector<16x32xf32>
    %232 = tpu.matmul %230, %231, %cst_116 {dimension_numbers = #tpu.dot_dimension_numbers<[1], [1], [0], [0], [0, 0, 1, 0], [], []>} : vector<16x8xf32>, vector<32x8xf32>, vector<16x32xf32> -> vector<16x32xf32>
    %cst_117 = arith.constant -9.99999984E+17 : f32
    %233 = vector.broadcast %cst_117 : f32 to vector<16x32xf32>
    %234 = arith.select %7, %233, %232 : vector<16x32xi1>, vector<16x32xf32>
    %cst_118 = arith.constant dense<0xFF800000> : vector<16xf32>
    %235 = vector.multi_reduction <maximumf>, %234, %cst_118 [1] : vector<16x32xf32> to vector<16xf32>
    %236 = vector.shape_cast %235 : vector<16xf32> to vector<16x1xf32>
    %237 = vector.broadcast %236 : vector<16x1xf32> to vector<16x32xf32>
    %238 = arith.subf %234, %237 : vector<16x32xf32>
    %239 = math.exp %238 : vector<16x32xf32>
    %cst_119 = arith.constant dense<0.000000e+00> : vector<16xf32>
    %240 = vector.multi_reduction <add>, %239, %cst_119 [1] : vector<16x32xf32> to vector<16xf32>
    %241 = vector.shape_cast %240 : vector<16xf32> to vector<16x1xf32>
    %242 = vector.broadcast %241 : vector<16x1xf32> to vector<16x32xf32>
    %243 = arith.divf %239, %242 : vector<16x32xf32>
    %244 = vector.extract_strided_slice %179 {offsets = [0, 16], sizes = [32, 8], strides = [1, 1]} : vector<32x32xf32> to vector<32x8xf32>
    %cst_120 = arith.constant dense<0.000000e+00> : vector<16x8xf32>
    %245 = tpu.matmul %243, %244, %cst_120 {dimension_numbers = #tpu.dot_dimension_numbers<[1], [0], [0], [1], [0, 0, 1, 1], [], []>} : vector<16x32xf32>, vector<32x8xf32>, vector<16x8xf32> -> vector<16x8xf32>
    %246 = vector.extract_strided_slice %181 {offsets = [16, 0], sizes = [8, 32], strides = [1, 1]} : vector<32x32xf32> to vector<8x32xf32>
    %cst_121 = arith.constant dense<0.000000e+00> : vector<16x32xf32>
    %247 = tpu.matmul %245, %246, %cst_121 {dimension_numbers = #tpu.dot_dimension_numbers<[1], [0], [0], [1], [0, 0, 1, 1], [], []>} : vector<16x8xf32>, vector<8x32xf32>, vector<16x32xf32> -> vector<16x32xf32>
    %248 = arith.addf %227, %247 : vector<16x32xf32>
    %249 = vector.extract_strided_slice %167 {offsets = [0, 24], sizes = [16, 8], strides = [1, 1]} : vector<16x32xf32> to vector<16x8xf32>
    %cst_122 = arith.constant 0.353553385 : f32
    %250 = vector.broadcast %cst_122 : f32 to vector<16x8xf32>
    %251 = arith.mulf %249, %250 : vector<16x8xf32>
    %252 = vector.extract_strided_slice %173 {offsets = [0, 24], sizes = [32, 8], strides = [1, 1]} : vector<32x32xf32> to vector<32x8xf32>
    %cst_123 = arith.constant dense<0.000000e+00> : vector<16x32xf32>
    %253 = tpu.matmul %251, %252, %cst_123 {dimension_numbers = #tpu.dot_dimension_numbers<[1], [1], [0], [0], [0, 0, 1, 0], [], []>} : vector<16x8xf32>, vector<32x8xf32>, vector<16x32xf32> -> vector<16x32xf32>
    %cst_124 = arith.constant -9.99999984E+17 : f32
    %254 = vector.broadcast %cst_124 : f32 to vector<16x32xf32>
    %255 = arith.select %7, %254, %253 : vector<16x32xi1>, vector<16x32xf32>
    %cst_125 = arith.constant dense<0xFF800000> : vector<16xf32>
    %256 = vector.multi_reduction <maximumf>, %255, %cst_125 [1] : vector<16x32xf32> to vector<16xf32>
    %257 = vector.shape_cast %256 : vector<16xf32> to vector<16x1xf32>
    %258 = vector.broadcast %257 : vector<16x1xf32> to vector<16x32xf32>
    %259 = arith.subf %255, %258 : vector<16x32xf32>
    %260 = math.exp %259 : vector<16x32xf32>
    %cst_126 = arith.constant dense<0.000000e+00> : vector<16xf32>
    %261 = vector.multi_reduction <add>, %260, %cst_126 [1] : vector<16x32xf32> to vector<16xf32>
    %262 = vector.shape_cast %261 : vector<16xf32> to vector<16x1xf32>
    %263 = vector.broadcast %262 : vector<16x1xf32> to vector<16x32xf32>
    %264 = arith.divf %260, %263 : vector<16x32xf32>
    %265 = vector.extract_strided_slice %179 {offsets = [0, 24], sizes = [32, 8], strides = [1, 1]} : vector<32x32xf32> to vector<32x8xf32>
    %cst_127 = arith.constant dense<0.000000e+00> : vector<16x8xf32>
    %266 = tpu.matmul %264, %265, %cst_127 {dimension_numbers = #tpu.dot_dimension_numbers<[1], [0], [0], [1], [0, 0, 1, 1], [], []>} : vector<16x32xf32>, vector<32x8xf32>, vector<16x8xf32> -> vector<16x8xf32>
    %267 = vector.extract_strided_slice %181 {offsets = [24, 0], sizes = [8, 32], strides = [1, 1]} : vector<32x32xf32> to vector<8x32xf32>
    %cst_128 = arith.constant dense<0.000000e+00> : vector<16x32xf32>
    %268 = tpu.matmul %266, %267, %cst_128 {dimension_numbers = #tpu.dot_dimension_numbers<[1], [0], [0], [1], [0, 0, 1, 1], [], []>} : vector<16x8xf32>, vector<8x32xf32>, vector<16x32xf32> -> vector<16x32xf32>
    %269 = arith.addf %248, %268 : vector<16x32xf32>
    %270 = vector.extract_strided_slice %201 {offsets = [0, 0], sizes = [8, 16], strides = [1, 1]} : vector<16x32xf32> to vector<8x16xf32>
    %c0_129 = arith.constant 0 : index
    %c0_130 = arith.constant 0 : index
    %271 = vector.load %arg16[%c0_129, %c0_130] : memref<16x16xf32, #tpu.memory_space<vmem>>, vector<8x16xf32>
    tpu.vector_store %arg16[%c0_129, %c0_130], %270 {strides = array<i32>} : memref<16x16xf32, #tpu.memory_space<vmem>>, vector<8x16xf32>,
    %272 = vector.extract_strided_slice %201 {offsets = [8, 16], sizes = [8, 16], strides = [1, 1]} : vector<16x32xf32> to vector<8x16xf32>
    %c8 = arith.constant 8 : index
    %c0_131 = arith.constant 0 : index
    %273 = vector.load %arg16[%c8, %c0_131] : memref<16x16xf32, #tpu.memory_space<vmem>>, vector<8x16xf32>
    tpu.vector_store %arg16[%c8, %c0_131], %272 {strides = array<i32>} : memref<16x16xf32, #tpu.memory_space<vmem>>, vector<8x16xf32>,
    %274 = arith.addf %269, %139 : vector<16x32xf32>
    %c2_132 = arith.constant 2 : index
    %c0_133 = arith.constant 0 : index
    %275 = vector.load %arg5[%c2_132, %c0_133] : memref<3x32xf32, #tpu.memory_space<vmem>>, vector<1x32xf32>
    %c2_134 = arith.constant 2 : index
    %c0_135 = arith.constant 0 : index
    %276 = vector.load %arg6[%c2_134, %c0_135] : memref<3x32xf32, #tpu.memory_space<vmem>>, vector<1x32xf32>
    %cst_136 = arith.constant dense<0.000000e+00> : vector<16xf32>
    %277 = vector.multi_reduction <add>, %274, %cst_136 [1] : vector<16x32xf32> to vector<16xf32>
    %278 = vector.shape_cast %277 : vector<16xf32> to vector<16x1xf32>
    %cst_137 = arith.constant 3.200000e+01 : f32
    %279 = vector.broadcast %cst_137 : f32 to vector<16x1xf32>
    %280 = arith.divf %278, %279 : vector<16x1xf32>
    %281 = vector.broadcast %280 : vector<16x1xf32> to vector<16x32xf32>
    %282 = arith.subf %274, %281 : vector<16x32xf32>
    %283 = arith.mulf %282, %282 : vector<16x32xf32>
    %cst_138 = arith.constant dense<0.000000e+00> : vector<16xf32>
    %284 = vector.multi_reduction <add>, %283, %cst_138 [1] : vector<16x32xf32> to vector<16xf32>
    %285 = vector.shape_cast %284 : vector<16xf32> to vector<16x1xf32>
    %cst_139 = arith.constant 3.200000e+01 : f32
    %286 = vector.broadcast %cst_139 : f32 to vector<16x1xf32>
    %287 = arith.divf %285, %286 : vector<16x1xf32>
    %cst_140 = arith.constant 9.99999997E-7 : f32
    %288 = vector.broadcast %cst_140 : f32 to vector<16x1xf32>
    %289 = arith.addf %287, %288 : vector<16x1xf32>
    %290 = math.rsqrt %289 : vector<16x1xf32>
    %291 = vector.broadcast %290 : vector<16x1xf32> to vector<16x32xf32>
    %292 = arith.mulf %282, %291 : vector<16x32xf32>
    %293 = vector.broadcast %275 : vector<1x32xf32> to vector<16x32xf32>
    %294 = arith.mulf %292, %293 : vector<16x32xf32>
    %295 = vector.broadcast %276 : vector<1x32xf32> to vector<16x32xf32>
    %296 = arith.addf %294, %295 : vector<16x32xf32>
    %c0_141 = arith.constant 0 : index
    %c0_142 = arith.constant 0 : index
    %297 = vector.load %arg11[%c0_141, %c0_142] : memref<32x64xf32, #tpu.memory_space<vmem>>, vector<32x64xf32>
    %cst_143 = arith.constant dense<0.000000e+00> : vector<16x64xf32>
    %298 = tpu.matmul %296, %297, %cst_143 {dimension_numbers = #tpu.dot_dimension_numbers<[1], [0], [0], [1], [0, 0, 1, 1], [], []>} : vector<16x32xf32>, vector<32x64xf32>, vector<16x64xf32> -> vector<16x64xf32>
    %c0_144 = arith.constant 0 : index
    %c0_145 = arith.constant 0 : index
    %299 = vector.load %arg12[%c0_144, %c0_145] : memref<1x64xf32, #tpu.memory_space<vmem>>, vector<1x64xf32>
    %300 = vector.broadcast %299 : vector<1x64xf32> to vector<16x64xf32>
    %301 = arith.addf %298, %300 : vector<16x64xf32>
    %cst_146 = arith.constant 0.000000e+00 : f32
    %302 = vector.broadcast %cst_146 : f32 to vector<16x64xf32>
    %303 = arith.maximumf %301, %302 : vector<16x64xf32>
    %c0_147 = arith.constant 0 : index
    %c0_148 = arith.constant 0 : index
    %304 = vector.load %arg13[%c0_147, %c0_148] : memref<64x32xf32, #tpu.memory_space<vmem>>, vector<64x32xf32>
    %cst_149 = arith.constant dense<0.000000e+00> : vector<16x32xf32>
    %305 = tpu.matmul %303, %304, %cst_149 {dimension_numbers = #tpu.dot_dimension_numbers<[1], [0], [0], [1], [0, 0, 1, 1], [], []>} : vector<16x64xf32>, vector<64x32xf32>, vector<16x32xf32> -> vector<16x32xf32>
    %c0_150 = arith.constant 0 : index
    %c0_151 = arith.constant 0 : index
    %306 = vector.load %arg14[%c0_150, %c0_151] : memref<1x32xf32, #tpu.memory_space<vmem>>, vector<1x32xf32>
    %307 = vector.broadcast %306 : vector<1x32xf32> to vector<16x32xf32>
    %308 = arith.addf %305, %307 : vector<16x32xf32>
    %309 = arith.addf %308, %274 : vector<16x32xf32>
    %c0_152 = arith.constant 0 : index
    %c0_153 = arith.constant 0 : index
    %310 = vector.load %arg15[%c0_152, %c0_153] : memref<16x32xf32, #tpu.memory_space<vmem>>, vector<16x32xf32>
    tpu.vector_store %arg15[%c0_152, %c0_153], %309 {strides = array<i32>} : memref<16x32xf32, #tpu.memory_space<vmem>>, vector<16x32xf32>,
    return
  }
  func.func @transform_0(%arg0: i32) -> (i32, i32) {
    %c0_i32 = arith.constant 0 : i32
    %c0_i32_0 = arith.constant 0 : i32
    %c0_i32_1 = arith.constant 0 : i32
    return %c0_i32, %c0_i32_0 : i32, i32
  }
  func.func @transform_1(%arg0: i32) -> (i32, i32) {
    %c0_i32 = arith.constant 0 : i32
    %c0_i32_0 = arith.constant 0 : i32
    %c0_i32_1 = arith.constant 0 : i32
    return %c0_i32, %c0_i32_0 : i32, i32
  }
  func.func @transform_2(%arg0: i32) -> (i32, i32) {
    %c0_i32 = arith.constant 0 : i32
    %c0_i32_0 = arith.constant 0 : i32
    %c0_i32_1 = arith.constant 0 : i32
    return %c0_i32, %c0_i32_0 : i32, i32
  }
  func.func @transform_3(%arg0: i32) -> (i32, i32) {
    %c0_i32 = arith.constant 0 : i32
    %c0_i32_0 = arith.constant 0 : i32
    %c0_i32_1 = arith.constant 0 : i32
    return %c0_i32, %c0_i32_0 : i32, i32
  }
  func.func @transform_4(%arg0: i32) -> (i32, i32) {
    %c0_i32 = arith.constant 0 : i32
    %c0_i32_0 = arith.constant 0 : i32
    %c0_i32_1 = arith.constant 0 : i32
    return %c0_i32, %c0_i32_0 : i32, i32
  }
  func.func @transform_5(%arg0: i32) -> (i32, i32) {
    %c0_i32 = arith.constant 0 : i32
    %c0_i32_0 = arith.constant 0 : i32
    %c0_i32_1 = arith.constant 0 : i32
    return %c0_i32, %c0_i32_0 : i32, i32
  }
  func.func @transform_6(%arg0: i32) -> (i32, i32, i32) {
    %c0_i32 = arith.constant 0 : i32
    %c0_i32_0 = arith.constant 0 : i32
    %c0_i32_1 = arith.constant 0 : i32
    %c0_i32_2 = arith.constant 0 : i32
    return %c0_i32, %c0_i32_0, %c0_i32_1 : i32, i32, i32
  }
  func.func @transform_7(%arg0: i32) -> (i32, i32) {
    %c0_i32 = arith.constant 0 : i32
    %c0_i32_0 = arith.constant 0 : i32
    %c0_i32_1 = arith.constant 0 : i32
    return %c0_i32, %c0_i32_0 : i32, i32
  }
  func.func @transform_8(%arg0: i32) -> (i32, i32, i32) {
    %c0_i32 = arith.constant 0 : i32
    %c0_i32_0 = arith.constant 0 : i32
    %c0_i32_1 = arith.constant 0 : i32
    %c0_i32_2 = arith.constant 0 : i32
    return %c0_i32, %c0_i32_0, %c0_i32_1 : i32, i32, i32
  }
  func.func @transform_9(%arg0: i32) -> (i32, i32) {
    %c0_i32 = arith.constant 0 : i32
    %c0_i32_0 = arith.constant 0 : i32
    %c0_i32_1 = arith.constant 0 : i32
    return %c0_i32, %c0_i32_0 : i32, i32
  }
  func.func @transform_10(%arg0: i32) -> (i32, i32) {
    %c0_i32 = arith.constant 0 : i32
    %c0_i32_0 = arith.constant 0 : i32
    %c0_i32_1 = arith.constant 0 : i32
    return %c0_i32, %c0_i32_0 : i32, i32
  }
  func.func @transform_11(%arg0: i32) -> (i32, i32) {
    %c0_i32 = arith.constant 0 : i32
    %c0_i32_0 = arith.constant 0 : i32
    %c0_i32_1 = arith.constant 0 : i32
    return %c0_i32, %c0_i32_0 : i32, i32
  }
  func.func @transform_12(%arg0: i32) -> (i32, i32) {
    %c0_i32 = arith.constant 0 : i32
    %c0_i32_0 = arith.constant 0 : i32
    %c0_i32_1 = arith.constant 0 : i32
    return %c0_i32, %c0_i32_0 : i32, i32
  }
  func.func @transform_13(%arg0: i32) -> (i32, i32) {
    %c0_i32 = arith.constant 0 : i32
    %c0_i32_0 = arith.constant 0 : i32
    %c0_i32_1 = arith.constant 0 : i32
    return %c0_i32, %c0_i32_0 : i32, i32
  }
  func.func @transform_14(%arg0: i32) -> (i32, i32) {
    %c0_i32 = arith.constant 0 : i32
    %c0_i32_0 = arith.constant 0 : i32
    %c0_i32_1 = arith.constant 0 : i32
    return %c0_i32, %c0_i32_0 : i32, i32
  }
  func.func @transform_15(%arg0: i32) -> (i32, i32) {
    %c0_i32 = arith.constant 0 : i32
    %c0_i32_0 = arith.constant 0 : i32
    %c0_i32_1 = arith.constant 0 : i32
    return %c0_i32, %c0_i32_0 : i32, i32
  }
  func.func @transform_16(%arg0: i32) -> (i32, i32) {
    %c0_i32 = arith.constant 0 : i32
    %c0_i32_0 = arith.constant 0 : i32
    %c0_i32_1 = arith.constant 0 : i32
    return %c0_i32, %c0_i32_0 : i32, i32
  }
}

</mosaic_0001>

<bundles_post_ra>
// kernel: tpu_custom_call.1
= control target key start
LH: loop header
LB: loop body
LE: loop exit
PB: predicated region body
PF: predicated region fallthrough
CT: control target
= control target key end

     0   :  { %s5146_s0 = inlined_call_operand.vmem [shape: f32[16,32], index: 0, kind: input, shape index: {}]   ;;  %s5147_s1 = inlined_call_operand.vmem [shape: f32[32,32], index: 1, kind: input, shape index: {}]   ;;  %s5148_s2 = inlined_call_operand.vmem [shape: f32[16,16], index: 2, kind: input, shape index: {}]   ;;  %s5149_s3 = inlined_call_operand.hbm [shape: f32[16,32], index: 3, kind: input, shape index: {}]   ;;  %s5150_s4 = inlined_call_operand.vmem [shape: f32[3,32], index: 4, kind: input, shape index: {}]   ;;  %s5151_s5 = inlined_call_operand.vmem [shape: f32[3,32], index: 5, kind: input, shape index: {}]   ;;  %s5152_s6 = inlined_call_operand.hbm [shape: f32[4,32,32], index: 6, kind: input, shape index: {}]   ;;  %s5153_s7 = inlined_call_operand.vmem [shape: f32[4,32], index: 7, kind: input, shape index: {}]   ;;  %s5154_s8 = inlined_call_operand.hbm [shape: f32[4,32,32], index: 8, kind: input, shape index: {}]   ;;  %s5155_s9 = inlined_call_operand.hbm [shape: f32[4,32], index: 9, kind: input, shape index: {}]   ;;  %s5156_s10 = inlined_call_operand.vmem [shape: f32[32,64], index: 10, kind: input, shape index: {}]   ;;  %s5157_s11 = inlined_call_operand.vmem [shape: f32[1,64], index: 11, kind: input, shape index: {}]   ;;  %s5158_s12 = inlined_call_operand.vmem [shape: f32[64,32], index: 12, kind: input, shape index: {}]   ;;  %s5159_s13 = inlined_call_operand.vmem [shape: f32[1,32], index: 13, kind: input, shape index: {}]   ;;  %s5160_s14 = inlined_call_operand.hbm [shape: f32[16,32], index: 14, kind: output, shape index: {0}]   ;;  %s5161_s15 = inlined_call_operand.hbm [shape: f32[16,16], index: 15, kind: output, shape index: {1}]   ;;  %s5162_s16 = inlined_call_operand.hbm [shape: f32[16,32], index: 16, kind: output, shape index: {2}]  }
   0x1   :  { %5164 = sst [smem:[#allocation19_spill]] %s5146_s0 }
   0x2   :  { %22 = vsyncpa [#allocation3], 0 }
   0x3   :  { %23 = vsyncpa [#allocation6], 0 }
   0x4   :  { %24 = vsyncpa [#allocation9], 0 }
   0x5   :  { %25 = vsyncpa [#allocation4], 0 }
   0x6   :  { %26 = vsyncpa [#allocation12], 0  ;;  %s4495_s21 = smov [#allocation5]   ;;  %s4496_s23 = smov [#allocation2]  }
   0x7   :  { %s54_s22 = sshll.u32 %s4495_s21, 4  ;;  %s38_s24 = sshll.u32 %s4496_s23, 4  ;;  %s55_s22 = int_to_ptr.vmem [resolvable:$true] %s54_s22  ;;  %s4592_s24 = int_to_ptr.vmem [resolvable:$true] %s38_s24 }
   0x8   :  { %s4331_s27 = scalar_lea.hbm %s5152_s6, 2048 }
   0x9   :  { %p4332_p0 = scmp.ne.s32.totalorder %s5152_s6, %s4331_s27  ;;  %p4335_p1 = scmp.lt.u32.totalorder %s4331_s27, %s5152_s6 }
   0xb   :  { %p4337_p2 = pnand %p4335_p1, %p4332_p0 }
   0xd   :  { %4340 = shalt.err (!%p4337_p2)
}
   0xe   :  { %s4341_s17 = scalar_lea.vmem %s55_s22, 2048  ;;  %p4346_p4 = scmp.lt.s32.totalorder %s55_s22, %s55_s22 }
   0xf   :  { %p4342_p3 = scmp.ne.s32.totalorder %s55_s22, %s4341_s17  ;;  %p4347_p5 = scmp.lt.s32.totalorder %s4341_s17, %s4341_s17 }
  0x11   :  { %p4348_p6 = por %p4347_p5, %p4346_p4 }
  0x13   :  { %p4349_p7 = pnand %p4348_p6, %p4342_p3 }
  0x15   :  { %4352 = shalt.err (!%p4349_p7)
}
  0x16   :  { %s4497_s18 = smov 128   ;;  %s4498_s19 = smov 8  }
  0x17   :  { %60 = dma.hbm_to_vmem [thread:$0]  %s5152_s6, 2048, %s55_s22, [#allocation6], %s4497_s18, %s4497_s18, %s4498_s19  }
  0x18   :  { %s4353_s26 = scalar_lea.hbm %s5149_s3, 256 }
  0x19   :  { %p4354_p8 = scmp.ne.s32.totalorder %s5149_s3, %s4353_s26  ;;  %p4357_p9 = scmp.lt.u32.totalorder %s4353_s26, %s5149_s3 }
  0x1b   :  { %p4359_p10 = pnand %p4357_p9, %p4354_p8 }
  0x1d   :  { %4362 = shalt.err (!%p4359_p10)
}
  0x1e   :  { %s4363_s0 = scalar_lea.vmem %s4592_s24, 256  ;;  %p4368_p12 = scmp.lt.s32.totalorder %s4592_s24, %s4592_s24 }
  0x1f   :  { %p4364_p11 = scmp.ne.s32.totalorder %s4592_s24, %s4363_s0  ;;  %p4369_p13 = scmp.lt.s32.totalorder %s4363_s0, %s4363_s0 }
  0x21   :  { %p4370_p0 = por %p4369_p13, %p4368_p12 }
  0x23   :  { %p4371_p1 = pnand %p4370_p0, %p4364_p11 }
  0x25   :  { %4374 = shalt.err (!%p4371_p1)
}
  0x26   :  { %44 = dma.hbm_to_vmem [thread:$0]  %s5149_s3, 256, %s4592_s24, [#allocation3], %s4497_s18, %s4497_s18, %s4498_s19  }
  0x27   :  { %s4499_s17 = smov [#allocation7]   ;;  %s4500_s21 = smov [#allocation8]  }
  0x28   :  { %s68_s20 = sshll.u32 %s4499_s17, 4  ;;  %s81_s23 = sshll.u32 %s4500_s21, 4  ;;  %s69_s20 = int_to_ptr.vmem [resolvable:$true] %s68_s20  ;;  %s82_s23 = int_to_ptr.vmem [resolvable:$true] %s81_s23 }
  0x29   :  { %s4375_s27 = scalar_lea.hbm %s5154_s8, 2048 }
  0x2a   :  { %p4376_p2 = scmp.ne.s32.totalorder %s5154_s8, %s4375_s27  ;;  %p4379_p3 = scmp.lt.u32.totalorder %s4375_s27, %s5154_s8 }
  0x2c   :  { %p4381_p4 = pnand %p4379_p3, %p4376_p2 }
  0x2e   :  { %4384 = shalt.err (!%p4381_p4)
}
  0x2f   :  { %s4385_s3 = scalar_lea.vmem %s69_s20, 2048  ;;  %p4390_p6 = scmp.lt.s32.totalorder %s69_s20, %s69_s20 }
  0x30   :  { %p4386_p5 = scmp.ne.s32.totalorder %s69_s20, %s4385_s3  ;;  %p4391_p7 = scmp.lt.s32.totalorder %s4385_s3, %s4385_s3 }
  0x32   :  { %p4392_p8 = por %p4391_p7, %p4390_p6 }
  0x34   :  { %p4393_p9 = pnand %p4392_p8, %p4386_p5 }
  0x36   :  { %4396 = shalt.err (!%p4393_p9)
}
  0x37   :  { %74 = dma.hbm_to_vmem [thread:$0]  %s5154_s8, 2048, %s69_s20, [#allocation6], %s4497_s18, %s4497_s18, %s4498_s19  }
  0x38   :  { %s4397_s21 = scalar_lea.hbm %s5155_s9, 64 }
  0x39   :  { %p4398_p10 = scmp.ne.s32.totalorder %s5155_s9, %s4397_s21  ;;  %p4401_p11 = scmp.lt.u32.totalorder %s4397_s21, %s5155_s9 }
  0x3b   :  { %p4403_p12 = pnand %p4401_p11, %p4398_p10 }
  0x3d   :  { %4406 = shalt.err (!%p4403_p12)
}
  0x3e   :  { %s4407_s29 = scalar_lea.vmem %s82_s23, 64  ;;  %p4412_p0 = scmp.lt.s32.totalorder %s82_s23, %s82_s23 }
  0x3f   :  { %p4408_p13 = scmp.ne.s32.totalorder %s82_s23, %s4407_s29  ;;  %p4413_p1 = scmp.lt.s32.totalorder %s4407_s29, %s4407_s29 }
  0x41   :  { %p4414_p2 = por %p4413_p1, %p4412_p0 }
  0x43   :  { %p4415_p3 = pnand %p4414_p2, %p4408_p13 }
  0x45   :  { %4418 = shalt.err (!%p4415_p3)
}
  0x46   :  { %84 = dma.hbm_to_vmem [thread:$0]  %s5155_s9, 64, %s82_s23, [#allocation9]  }
  0x47   :  { %4485 = dma.done.wait [#allocation3], 256  }
  0x48   :  { %4486 = vsyncadd [#allocation3], 4294967040 }
  0x49   :  { %4487 = dma.done.wait [#allocation6], 4096  }
  0x4a   :  { %4488 = vsyncadd [#allocation6], 4294963200 }
  0x4b   :  { %4489 = dma.done.wait [#allocation9], 64  }
  0x4c   :  { %4490 = vsyncadd [#allocation9], 4294967232  ;;  %vm121_vm0 = vcmask 261120   ;;  %s5165_s3 = sld [smem:[#allocation19_spill]]  ;;  %v163_v14 = vld [vmem:[#allocation5] sm:$0xff]  ;;  %v164_v15 = vld [vmem:[#allocation5 + $0x8] sm:$0xff] }
  0x4d   :  { %v339_v16 = vld [vmem:[#allocation5 + $0x40] sm:$0xff]  ;;  %v3945_v17 = vpack.c.bf16 %v164_v15, %v163_v14  ;;  %v340_v18 = vld [vmem:[#allocation5 + $0x48] sm:$0xff]  ;;  %v165_v19 = vld [vmem:[#allocation5 + $0x10] sm:$0xff]  ;;  %vm436_vm1 = vcmask 64512   ;;  %vm526_vm5 = vcmask 130048   ;;  %s4503_s24 = smov 104  }
  0x4e   :  { %v166_v20 = vld [vmem:[#allocation5 + $0x18] sm:$0xff]  ;;  %v3961_v21 = vpack.c.bf16 %v340_v18, %v339_v16  ;;  %v341_v23 = vld [vmem:[#allocation5 + $0x50] sm:$0xff]  ;;  %v254_v26 = vld [vmem:[#allocation5 + $0x20] sm:$0xff]  ;;  %vm3255_vm8 = vcmask 523264  }
  0x4f   :  { %v3949_v22 = vpack.c.bf16 %v166_v20, %v165_v19  ;;  %3946 = vmatprep.subr.bf16.mxu1 %v3945_v17  ;;  %v342_v24 = vld [vmem:[#allocation5 + $0x58] sm:$0xff]  ;;  %v255_v27 = vld [vmem:[#allocation5 + $0x28] sm:$0xff]  ;;  %v3391_v36 = vld [vmem:[%s5150_s4] ss:$0 sm:$0xff] }
  0x50   :  { %3948 = vmatpush3.bf16.msra.mxu1 %v3945_v17  ;;  %3962 = vmatprep.subr.bf16.mxu0 %v3961_v21  ;;  %v3965_v25 = vpack.c.bf16 %v342_v24, %v341_v23  ;;  %v3953_v28 = vpack.c.bf16 %v255_v27, %v254_v26  ;;  %v3392_v38 = vld [vmem:[%s5151_s5] ss:$0 sm:$0xff]  ;;  %v257_v44 = vld [vmem:[#allocation5 + $0x38] sm:$0xff]  ;;  %v3399_v48 = vld [vmem:[%s5153_s7 + $0x2] ss:$0 sm:$0xff] }
  0x51   :  { %3964 = vmatpush3.bf16.msra.mxu0 %v3961_v21  ;;  %3950 = vmatprep.subr.bf16.mxu1 %v3949_v22  ;;  %v256_v43 = vld [vmem:[#allocation5 + $0x30] sm:$0xff]  ;;  %vm4705_vm2 = vmpackc.low %vm436_vm1, %vm436_vm1 }
  0x52   :  { %v4659_v0 = vld [vmem:[%s5165_s3] sm:$0xff]  ;;  %v4664_v1 = vld [vmem:[%s5165_s3 + $0x8] sm:$0xff]  ;;  %3966 = vmatprep.subr.bf16.mxu0 %v3965_v25  ;;  %v3957_v47 = vpack.c.bf16 %v257_v44, %v256_v43  ;;  %s4502_s3 = smov 112   ;;  %v424_v44 = vld [vmem:[#allocation5 + $0x60] sm:$0xff] }
  0x53   :  { %v122_v2 = vsel %vm121_vm0, %v4659_v0, 0.0  ;;  %v125_v3 = vsel %vm121_vm0, %v4664_v1, 0.0  ;;  %v3393_v49 = vld [vmem:[%s5153_s7] ss:$0 sm:$0xff]  ;;  %v3396_v60 = vld [vmem:[%s5153_s7 + $0x1] ss:$0 sm:$0xff] }
  0x54   :  { %123 = vadd.xlane.f32.xlu0 %v122_v2  ;;  %3952 = vmatpush3.bf16.msra.mxu1 %v3949_v22 }
  0x55   :  { %3968 = vmatpush3.bf16.msra.mxu0 %v3965_v25  ;;  %3954 = vmatprep.subr.bf16.mxu1 %v3953_v28 }
  0x58   :  { %126 = vadd.xlane.f32.xlu0 %v125_v3 }
  0xe1   :  { %v124_v4 = vpop.xlane.xlu0 %123 }
  0xe2   :  { %v129_v5 = vmul.f32 0.03125, %v124_v4 }
  0xe4   :  { %v131_v6 = vsub.f32 %v4659_v0, %v129_v5 }
  0xe5   :  { %v127_v7 = vpop.xlane.xlu0 %126 }
  0xe6   :  { %v130_v8 = vmul.f32 0.03125, %v127_v7  ;;  %v133_v9 = vmul.f32 %v131_v6, %v131_v6 }
  0xe8   :  { %v132_v10 = vsub.f32 %v4664_v1, %v130_v8  ;;  %v135_v11 = vsel %vm121_vm0, %v133_v9, 0.0  ;;  %v4722_v8 = vld [vmem:[%s5148_s2 + $0x8] sm:$0xff]  ;;  %v4727_v9 = vld [vmem:[%s5148_s2] sm:$0xff]  ;;  %s4501_s2 = smov 120  }
  0xe9   :  { %136 = vadd.xlane.f32.xlu1 %v135_v11  ;;  %vm114_vm3 = vcmp.gt.f32.partialorder %v4722_v8, 0.0  ;;  %vm113_vm4 = vcmp.gt.f32.partialorder %v4727_v9, 0.0 }
  0xea   :  { %v134_v12 = vmul.f32 %v132_v10, %v132_v10 }
  0xec   :  { %v138_v13 = vsel %vm121_vm0, %v134_v12, 0.0 }
  0xed   :  { %139 = vadd.xlane.f32.xlu1 %v138_v13 }
 0x176   :  { %v137_v29 = vpop.xlane.xlu1 %136 }
 0x177   :  { %v141_v30 = vmul.f32 0.03125, %v137_v29 }
 0x179   :  { %v143_v31 = vadd.f32 1e-06, %v141_v30 }
 0x17a   :  { %v140_v32 = vpop.xlane.xlu1 %139 }
 0x17b   :  { %4255 = vrsqrt.f32 %v143_v31  ;;  %v142_v33 = vmul.f32 0.03125, %v140_v32 }
 0x17d   :  { %v144_v34 = vadd.f32 1e-06, %v142_v33 }
 0x17f   :  { %4257 = vrsqrt.f32 %v144_v34 }
 0x185   :  { %v4256_v35 = vpop.eup %4255 }
 0x186   :  { %v147_v37 = vmul.f32 %v4256_v35, %v131_v6 }
 0x188   :  { %v153_v39 = vmul.f32 %v3391_v36, %v147_v37 }
 0x189   :  { %v4258_v40 = vpop.eup %4257 }
 0x18a   :  { %v159_v41 = vadd.f32 %v3392_v38, %v153_v39  ;;  %v148_v42 = vmul.f32 %v4258_v40, %v132_v10 }
 0x18c   :  { %3667 = vmatprep.mubr.msk.f32.mxu1 %vm121_vm0, %v159_v41  ;;  %161 = vst.msk [vmem:[#allocation13] sm:$0xff] %vm121_vm0, %v159_v41  ;;  %3689 = vmatprep.mubr.msk.f32.mxu0 %vm121_vm0, %v159_v41  ;;  %v154_v45 = vmul.f32 %v3391_v36, %v148_v42 }
 0x18e   :  { %v160_v46 = vadd.f32 %v3392_v38, %v154_v45 }
 0x190   :  { %3668 = vmatmul.mubr.msk.f32.vlgmr.msra.gmra.mrb[0].mxu1 %vm121_vm0, %v160_v46  ;;  %162 = vst.msk [vmem:[#allocation13 + $0x8] sm:$0xff] %vm121_vm0, %v160_v46  ;;  %3690 = vmatmul.mubr.msk.f32.vlgmr.msra.gmra.mrb[0].mxu0 %vm121_vm0, %v160_v46 }
 0x191   :  { %3956 = vmatpush3.bf16.msra.mxu1 %v3953_v28  ;;  %3678 = vmatprep.mubr.msk.f32.mxu1 %vm121_vm0, %v159_v41 }
 0x192   :  { %3958 = vmatprep.subr.bf16.mxu1 %v3957_v47 }
 0x195   :  { %3960 = vmatpush3.bf16.msra.mxu1 %v3957_v47 }
 0x198   :  { %3679 = vmatmul.mubr.msk.f32.vlgmr.msra.gmra.mrb[2].mxu1 %vm121_vm0, %v160_v46 }
 0x263   :  { %v3669_v50 = vpop.f32.mrb[0].mxu1  ;;  %v3691_v51 = vpop.f32.mrb[0].mxu0 }
 0x264   :  { %v420_v52 = vadd.f32 %v3691_v51, %v3399_v48  ;;  %v244_v53 = vpop.f32.mrb[1].mxu1  ;;  %v414_v54 = vpop.f32.mrb[1].mxu0  ;;  %v250_v6 = vadd.f32 %v3669_v50, %v3393_v49 }
 0x265   :  { %v245_v55 = vadd.f32 %v3393_v49, %v244_v53  ;;  %v415_v56 = vadd.f32 %v3399_v48, %v414_v54 }
 0x266   :  { %v4715_v7 = vmul.f32 0.35355338, %v250_v6 }
 0x267   :  { %v4694_v57 = vmul.f32 0.35355338, %v245_v55  ;;  %v3975_v58 = vpack.c.bf16 %v420_v52, %v415_v56  ;;  %v4696_v59 = vpack.i.bf16 %v420_v52, %v415_v56 }
 0x269   :  { %3696 = vmatprep.mubr.msk.f32.mxu1 %vm436_vm1, %v4694_v57  ;;  %3976 = vmatprep.subr.bf16.mxu0 %v3975_v58 }
 0x26a   :  { %3978 = vmatpush3.bf16.msra.mxu0 %v3975_v58 }
 0x26b   :  { %v3680_v61 = vpop.f32.mrb[2].mxu1 }
 0x26c   :  { %v335_v62 = vadd.f32 %v3680_v61, %v3396_v60  ;;  %v329_v63 = vpop.f32.mrb[3].mxu1 }
 0x26d   :  { %v330_v2 = vadd.f32 %v3396_v60, %v329_v63 }
 0x26f   :  { %v3969_v4 = vpack.c.bf16 %v335_v62, %v330_v2  ;;  %v4709_v5 = vpack.i.bf16 %v335_v62, %v330_v2 }
 0x271   :  { %3971 = vmatprep.subr.msk.bf16.mxu1 %vm4705_vm2, %v3969_v4 }
 0x272   :  { %3974 = vmatpush3.bf16.xpose.msk.msra.mxu1 %vm4705_vm2, %v3969_v4 }
 0x273   :  { %3706 = vmatprep.subr.mxu1 %v424_v44 }
 0x279   :  { %3697 = vmatmul.mubr.msk.f32.vlgmr.msra.gmra.mrb[4].mxu1 %vm436_vm1, %v4715_v7 }
 0x27a   :  { %3707 = vmatpush3.msra.mxu1 %v424_v44 }
 0x34c   :  { %v3698_v10 = vpop.f32.mrb[4].mxu1 }
 0x34d   :  { %v525_v11 = vsel %vm114_vm3, -1e+18, %v3698_v10  ;;  %v515_v12 = vpop.f32.mrb[5].mxu1 }
 0x34e   :  { %v524_v13 = vsel %vm113_vm4, -1e+18, %v515_v12  ;;  %v530_v14 = vsel %vm526_vm5, %v525_v11, -inf }
 0x34f   :  { %531 = vmax.xlane.f32.xlu1 %v530_v14  ;;  %v527_v15 = vsel %vm526_vm5, %v524_v13, -inf }
 0x350   :  { %528 = vmax.xlane.f32.xlu0 %v527_v15 }
 0x3dc   :  { %v532_v16 = vpop.xlane.xlu1 %531 }
 0x3dd   :  { %v534_v17 = vsub.f32 %v525_v11, %v532_v16  ;;  %v529_v18 = vpop.xlane.xlu0 %528 }
 0x3de   :  { %v533_v19 = vsub.f32 %v524_v13, %v529_v18 }
 0x3df   :  { %v537_v20 = vmul.f32 1.442695, %v534_v17 }
 0x3e0   :  { %v535_v21 = vmul.f32 1.442695, %v533_v19 }
 0x3e1   :  { %4259 = vpow2.f32 %v537_v20 }
 0x3e2   :  { %4261 = vpow2.f32 %v535_v21 }
 0x3eb   :  { %v4260_v22 = vpop.eup %4259 }
 0x3ec   :  { %v4262_v23 = vpop.eup %4261  ;;  %v542_v24 = vsel %vm526_vm5, %v4260_v22, 0.0 }
 0x3ed   :  { %543 = vadd.xlane.f32.xlu1 %v542_v24  ;;  %v539_v25 = vsel %vm526_vm5, %v4262_v23, 0.0 }
 0x3ee   :  { %540 = vadd.xlane.f32.xlu0 %v539_v25 }
 0x3fe   :  { %713 = vrot.lane.b32.xlu1 %v4694_v57, %s4501_s2 }
 0x402   :  { %715 = vrot.lane.b32.xlu1 %v4715_v7, %s4501_s2 }
 0x404   :  { %4166 = vrot.lane.b32.xlu0 %v4709_v5, %s4501_s2 }
 0x406   :  { %4171 = vrot.lane.b32.xlu1 %v4709_v5, %s4502_s3 }
 0x408   :  { %1000 = vrot.lane.b32.xlu0 %v4694_v57, %s4502_s3 }
 0x40a   :  { %1002 = vrot.lane.b32.xlu1 %v4715_v7, %s4502_s3 }
 0x47a   :  { %v544_v26 = vpop.xlane.xlu1 %543 }
 0x47b   :  { %4263 = vrcp.f32 %v544_v26  ;;  %v541_v27 = vpop.xlane.xlu0 %540 }
 0x47c   :  { %4265 = vrcp.f32 %v541_v27 }
 0x47e   :  { %v714_v28 = vpop.permute.xlu1 %713 }
 0x47f   :  { %v4167_v29 = vpop.permute.xlu0 %4166 }
 0x480   :  { %v4169_v30 = vunpack.i.h.bf16 %v4167_v29  ;;  %v4168_v31 = vunpack.i.l.bf16 %v4167_v29 }
 0x482   :  { %v3979_v32 = vpack.c.bf16 %v4169_v30, %v4168_v31  ;;  %v716_v33 = vpop.permute.xlu1 %715 }
 0x483   :  { %v1001_v42 = vpop.permute.xlu0 %1000 }
 0x484   :  { %3981 = vmatprep.subr.msk.bf16.mxu0 %vm4705_vm2, %v3979_v32 }
 0x485   :  { %v4264_v34 = vpop.eup %4263 }
 0x486   :  { %v4266_v35 = vpop.eup %4265  ;;  %v4172_v36 = vpop.permute.xlu1 %4171  ;;  %v548_v40 = vmul.f32 %v4264_v34, %v4260_v22 }
 0x487   :  { %v4174_v37 = vunpack.i.h.bf16 %v4172_v36  ;;  %v4173_v38 = vunpack.i.l.bf16 %v4172_v36  ;;  %v546_v39 = vmul.f32 %v4266_v35, %v4262_v23 }
 0x489   :  { %v3989_v41 = vpack.c.bf16 %v4174_v37, %v4173_v38  ;;  %3703 = vmatprep.mubr.msk.f32.mxu0 %vm526_vm5, %v546_v39 }
 0x48a   :  { %3704 = vmatmul.mubr.msk.f32.vlgmr.msra.gmra.mrb[2].mxu0 %vm526_vm5, %v548_v40  ;;  %v1003_v43 = vpop.permute.xlu1 %1002 }
 0x48b   :  { %3984 = vmatpush3.bf16.xpose.msk.msra.mxu0 %vm4705_vm2, %v3979_v32  ;;  %3715 = vmatprep.mubr.msk.f32.mxu0 %vm436_vm1, %v714_v28 }
 0x48c   :  { %3991 = vmatprep.subr.msk.bf16.mxu0 %vm4705_vm2, %v3989_v41 }
 0x492   :  { %3716 = vmatmul.mubr.msk.f32.vlgmr.msra.gmra.mrb[4].mxu0 %vm436_vm1, %v716_v33 }
 0x493   :  { %3994 = vmatpush3.bf16.xpose.msk.msra.mxu0 %vm4705_vm2, %v3989_v41  ;;  %3734 = vmatprep.mubr.msk.f32.mxu0 %vm436_vm1, %v1001_v42 }
 0x49a   :  { %3735 = vmatmul.mubr.msk.f32.vlgmr.msra.gmra.mrb[6].mxu0 %vm436_vm1, %v1003_v43  ;;  %v425_v43 = vld [vmem:[#allocation5 + $0x68] sm:$0xff] }
 0x55d   :  { %v3705_v45 = vpop.f32.mrb[2].mxu0 }
 0x55e   :  { %v621_v46 = vpop.f32.mrb[3].mxu0 }
 0x55f   :  { %3708 = vmatprep.mubr.msk.f32.mxu1 %vm436_vm1, %v621_v46 }
 0x560   :  { %3709 = vmatmul.mubr.msk.f32.vlgmr.msra.gmra.mrb[6].mxu1 %vm436_vm1, %v3705_v45 }
 0x565   :  { %v3717_v47 = vpop.f32.mrb[4].mxu0 }
 0x566   :  { %v805_v48 = vsel %vm114_vm3, -1e+18, %v3717_v47  ;;  %v795_v49 = vpop.f32.mrb[5].mxu0 }
 0x567   :  { %v804_v50 = vsel %vm113_vm4, -1e+18, %v795_v49  ;;  %v809_v51 = vsel %vm526_vm5, %v805_v48, -inf }
 0x568   :  { %810 = vmax.xlane.f32.xlu1 %v809_v51  ;;  %v806_v52 = vsel %vm526_vm5, %v804_v50, -inf }
 0x569   :  { %807 = vmax.xlane.f32.xlu0 %v806_v52 }
 0x56d   :  { %v3736_v53 = vpop.f32.mrb[6].mxu0 }
 0x56e   :  { %v1082_v54 = vpop.f32.mrb[7].mxu0  ;;  %v1092_v55 = vsel %vm114_vm3, -1e+18, %v3736_v53 }
 0x56f   :  { %v1096_v56 = vsel %vm526_vm5, %v1092_v55, -inf  ;;  %v1091_v18 = vsel %vm113_vm4, -1e+18, %v1082_v54 }
 0x570   :  { %v1093_v19 = vsel %vm526_vm5, %v1091_v18, -inf }
 0x579   :  { %4181 = vrot.lane.b32.xlu1 %v4709_v5, %s4503_s24 }
 0x57d   :  { %1285 = vrot.lane.b32.xlu1 %v4694_v57, %s4503_s24 }
 0x581   :  { %1287 = vrot.lane.b32.xlu1 %v4715_v7, %s4503_s24 }
 0x5a5   :  { %1097 = vmax.xlane.f32.xlu1 %v1096_v56 }
 0x5f5   :  { %v811_v58 = vpop.xlane.xlu1 %810 }
 0x5f6   :  { %v813_v60 = vsub.f32 %v805_v48, %v811_v58  ;;  %v808_v61 = vpop.xlane.xlu0 %807 }
 0x5f7   :  { %v812_v62 = vsub.f32 %v804_v50, %v808_v61 }
 0x5f8   :  { %v816_v63 = vmul.f32 1.442695, %v813_v60 }
 0x5f9   :  { %v814_v2 = vmul.f32 1.442695, %v812_v62  ;;  %v4182_v4 = vpop.permute.xlu1 %4181 }
 0x5fa   :  { %4267 = vpow2.f32 %v816_v63  ;;  %v4184_v5 = vunpack.i.h.bf16 %v4182_v4  ;;  %v4183_v6 = vunpack.i.l.bf16 %v4182_v4 }
 0x5fb   :  { %4269 = vpow2.f32 %v814_v2 }
 0x5fc   :  { %v3999_v57 = vpack.c.bf16 %v4184_v5, %v4183_v6  ;;  %v426_v5 = vld [vmem:[#allocation5 + $0x70] sm:$0xff] }
 0x5fd   :  { %v1286_v10 = vpop.permute.xlu1 %1285 }
 0x5fe   :  { %4001 = vmatprep.subr.msk.bf16.mxu0 %vm4705_vm2, %v3999_v57  ;;  %3753 = vmatprep.mubr.msk.f32.mxu0 %vm436_vm1, %v1286_v10 }
 0x5ff   :  { %4004 = vmatpush3.bf16.xpose.msk.msra.mxu0 %vm4705_vm2, %v3999_v57 }
 0x601   :  { %v1288_v11 = vpop.permute.xlu1 %1287 }
 0x604   :  { %v4268_v7 = vpop.eup %4267 }
 0x605   :  { %v821_v12 = vsel %vm526_vm5, %v4268_v7, 0.0  ;;  %v4270_v13 = vpop.eup %4269 }
 0x606   :  { %3754 = vmatmul.mubr.msk.f32.vlgmr.msra.gmra.mrb[8].mxu0 %vm436_vm1, %v1288_v11  ;;  %822 = vadd.xlane.f32.xlu0 %v821_v12  ;;  %v818_v14 = vsel %vm526_vm5, %v4270_v13, 0.0 }
 0x60a   :  { %819 = vadd.xlane.f32.xlu0 %v818_v14 }
 0x620   :  { %4176 = vrot.lane.b32.xlu0 %v4696_v59, %s4501_s2 }
 0x632   :  { %v1098_v15 = vpop.xlane.xlu1 %1097 }
 0x633   :  { %v1100_v16 = vsub.f32 %v1092_v55, %v1098_v15 }
 0x635   :  { %v1103_v17 = vmul.f32 1.442695, %v1100_v16 }
 0x637   :  { %4271 = vpow2.f32 %v1103_v17 }
 0x63f   :  { %1094 = vmax.xlane.f32.xlu0 %v1093_v19 }
 0x641   :  { %v4795_v20 = vpop.eup %4271 }
 0x642   :  { %v1108_v21 = vsel %vm526_vm5, %v4795_v20, 0.0 }
 0x643   :  { %1109 = vadd.xlane.f32.xlu0 %v1108_v21  ;;  %v3402_v21 = vld [vmem:[%s5153_s7 + $0x3] ss:$0 sm:$0xff]  ;;  %s4504_s7 = smov [#allocation11]  }
 0x693   :  { %v823_v22 = vpop.xlane.xlu0 %822 }
 0x694   :  { %4273 = vrcp.f32 %v823_v22 }
 0x697   :  { %v820_v23 = vpop.xlane.xlu0 %819 }
 0x698   :  { %4275 = vrcp.f32 %v820_v23 }
 0x69b   :  { %v4177_v24 = vpop.permute.xlu0 %4176 }
 0x69c   :  { %v4179_v25 = vunpack.i.h.bf16 %v4177_v24  ;;  %v4178_v26 = vunpack.i.l.bf16 %v4177_v24 }
 0x69e   :  { %v3985_v27 = vpack.c.bf16 %v4179_v25, %v4178_v26  ;;  %v4274_v28 = vpop.eup %4273 }
 0x69f   :  { %v827_v31 = vmul.f32 %v4274_v28, %v4268_v7 }
 0x6a0   :  { %3986 = vmatprep.subr.bf16.mxu1 %v3985_v27 }
 0x6a1   :  { %3988 = vmatpush3.bf16.msra.mxu1 %v3985_v27 }
 0x6a2   :  { %v4276_v29 = vpop.eup %4275  ;;  %3725 = vmatprep.subr.mxu1 %v425_v43 }
 0x6a3   :  { %v825_v30 = vmul.f32 %v4276_v29, %v4270_v13 }
 0x6a5   :  { %3722 = vmatprep.mubr.msk.f32.mxu1 %vm526_vm5, %v825_v30  ;;  %v1703_v30 = vld [vmem:[#allocation7 + $0x20] sm:$0xff] }
 0x6a6   :  { %3723 = vmatmul.mubr.msk.f32.vlgmr.msra.gmra.mrb[8].mxu1 %vm526_vm5, %v827_v31  ;;  %v1704_v31 = vld [vmem:[#allocation7 + $0x28] sm:$0xff] }
 0x6a7   :  { %3726 = vmatpush3.msra.mxu1 %v425_v43 }
 0x6cc   :  { %v1095_v32 = vpop.xlane.xlu0 %1094 }
 0x6cd   :  { %v1099_v33 = vsub.f32 %v1091_v18, %v1095_v32  ;;  %v4017_v32 = vpack.c.bf16 %v1704_v31, %v1703_v30 }
 0x6cf   :  { %v1101_v34 = vmul.f32 1.442695, %v1099_v33 }
 0x6d0   :  { %v1110_v9 = vpop.xlane.xlu0 %1109 }
 0x6d1   :  { %4277 = vpow2.f32 %v1101_v34 }
 0x6d9   :  { %v3755_v35 = vpop.f32.mrb[8].mxu0 }
 0x6da   :  { %v1367_v36 = vpop.f32.mrb[9].mxu0  ;;  %v1377_v41 = vsel %vm114_vm3, -1e+18, %v3755_v35 }
 0x6db   :  { %v4278_v37 = vpop.eup %4277  ;;  %v1376_v38 = vsel %vm113_vm4, -1e+18, %v1367_v36  ;;  %v1381_v42 = vsel %vm526_vm5, %v1377_v41, -inf }
 0x6dc   :  { %v1378_v39 = vsel %vm526_vm5, %v1376_v38, -inf  ;;  %v1105_v40 = vsel %vm526_vm5, %v4278_v37, 0.0 }
 0x6dd   :  { %1379 = vmax.xlane.f32.xlu1 %v1378_v39  ;;  %1106 = vadd.xlane.f32.xlu0 %v1105_v40 }
 0x6e1   :  { %1382 = vmax.xlane.f32.xlu1 %v1381_v42  ;;  %v1706_v42 = vld [vmem:[#allocation7 + $0x38] sm:$0xff] }
 0x6f3   :  { %4186 = vrot.lane.b32.xlu0 %v4696_v59, %s4502_s3 }
 0x76a   :  { %v1380_v44 = vpop.xlane.xlu1 %1379  ;;  %v1107_v45 = vpop.xlane.xlu0 %1106 }
 0x76b   :  { %v1384_v46 = vsub.f32 %v1376_v38, %v1380_v44  ;;  %4279 = vrcp.f32 %v1107_v45  ;;  %v4849_v44 = vld [vmem:[%s5147_s1 + $0x8] sm:$0xff]  ;;  %v4856_v45 = vld [vmem:[%s5147_s1 + $0x10] sm:$0xff] }
 0x76c   :  { %4281 = vrcp.f32 %v1110_v9  ;;  %v107_v9 = vld [vmem:[%s5147_s1] sm:$0xff] }
 0x76d   :  { %v1386_v51 = vmul.f32 1.442695, %v1384_v46  ;;  %v4863_v46 = vld [vmem:[%s5147_s1 + $0x18] sm:$0xff] }
 0x76e   :  { %v1383_v47 = vpop.xlane.xlu1 %1382  ;;  %v4187_v48 = vpop.permute.xlu0 %4186 }
 0x76f   :  { %v1385_v8 = vsub.f32 %v1377_v41, %v1383_v47  ;;  %v4189_v49 = vunpack.i.h.bf16 %v4187_v48  ;;  %v4188_v50 = vunpack.i.l.bf16 %v4187_v48  ;;  %v1705_v41 = vld [vmem:[#allocation7 + $0x30] sm:$0xff]  ;;  %v1612_v47 = vld [vmem:[#allocation7] sm:$0xff]  ;;  %v1613_v48 = vld [vmem:[#allocation7 + $0x8] sm:$0xff] }
 0x770   :  { %v4021_v43 = vpack.c.bf16 %v1706_v42, %v1705_v41  ;;  %v1813_v41 = vld [vmem:[#allocation7 + $0x58] sm:$0xff] }
 0x771   :  { %v1388_v52 = vmul.f32 1.442695, %v1385_v8  ;;  %v3995_v53 = vpack.c.bf16 %v4189_v49, %v4188_v50  ;;  %v4009_v8 = vpack.c.bf16 %v1613_v48, %v1612_v47  ;;  %v1614_v49 = vld [vmem:[#allocation7 + $0x10] sm:$0xff]  ;;  %v1615_v50 = vld [vmem:[#allocation7 + $0x18] sm:$0xff] }
 0x772   :  { %v4920_v47 = vld [vmem:[#allocation2 + $0x8] sm:$0xff]  ;;  %v4922_v48 = vld [vmem:[#allocation2] sm:$0xff] }
 0x773   :  { %4283 = vpow2.f32 %v1388_v52  ;;  %3996 = vmatprep.subr.bf16.mxu1 %v3995_v53  ;;  %4010 = vmatprep.subr.bf16.mxu0 %v4009_v8  ;;  %vm118_vm6 = vcmp.gt.f32.partialorder %v4920_v47, 0.0  ;;  %vm117_vm7 = vcmp.gt.f32.partialorder %v4922_v48, 0.0 }
 0x774   :  { %4285 = vpow2.f32 %v1386_v51  ;;  %4012 = vmatpush3.bf16.msra.mxu0 %v4009_v8  ;;  %v4013_v51 = vpack.c.bf16 %v1615_v50, %v1614_v49 }
 0x775   :  { %v4280_v54 = vpop.eup %4279 }
 0x776   :  { %v4282_v58 = vpop.eup %4281  ;;  %v1112_v60 = vmul.f32 %v4280_v54, %v4278_v37  ;;  %4014 = vmatprep.subr.bf16.mxu0 %v4013_v51 }
 0x777   :  { %v1114_v62 = vmul.f32 %v4282_v58, %v4795_v20 }
 0x778   :  { %4016 = vmatpush3.bf16.msra.mxu0 %v4013_v51 }
 0x779   :  { %v3724_v55 = vpop.f32.mrb[8].mxu1 }
 0x77a   :  { %v908_v56 = vpop.f32.mrb[9].mxu1 }
 0x77b   :  { %3727 = vmatprep.mubr.msk.f32.mxu1 %vm436_vm1, %v908_v56 }
 0x77c   :  { %3728 = vmatmul.mubr.msk.f32.vlgmr.msra.gmra.mrb[6].mxu1 %vm436_vm1, %v3724_v55 }
 0x77d   :  { %v4284_v61 = vpop.eup %4283  ;;  %3998 = vmatpush3.bf16.msra.mxu1 %v3995_v53  ;;  %3741 = vmatprep.mubr.msk.f32.mxu1 %vm526_vm5, %v1112_v60 }
 0x77e   :  { %v1393_v63 = vsel %vm526_vm5, %v4284_v61, 0.0  ;;  %v4286_v2 = vpop.eup %4285  ;;  %3744 = vmatprep.subr.mxu1 %v426_v5 }
 0x77f   :  { %1394 = vadd.xlane.f32.xlu1 %v1393_v63  ;;  %v1390_v4 = vsel %vm526_vm5, %v4286_v2, 0.0  ;;  %v3436_v63 = vld [vmem:[%s5151_s5 + $0x1] ss:$0 sm:$0xff] }
 0x780   :  { %3742 = vmatmul.mubr.msk.f32.vlgmr.msra.gmra.mrb[10].mxu1 %vm526_vm5, %v1114_v62 }
 0x781   :  { %3745 = vmatpush3.msra.mxu1 %v426_v5 }
 0x783   :  { %1391 = vadd.xlane.f32.xlu1 %v1390_v4 }
 0x794   :  { %4191 = vrot.lane.b32.xlu1 %v4696_v59, %s4503_s24  ;;  %v427_v59 = vld [vmem:[#allocation5 + $0x78] sm:$0xff] }
 0x80c   :  { %v1395_v6 = vpop.xlane.xlu1 %1394 }
 0x810   :  { %v1392_v57 = vpop.xlane.xlu1 %1391 }
 0x811   :  { %4287 = vrcp.f32 %v1392_v57 }
 0x812   :  { %4289 = vrcp.f32 %v1395_v6 }
 0x814   :  { %v4192_v10 = vpop.permute.xlu1 %4191 }
 0x815   :  { %v4194_v7 = vunpack.i.h.bf16 %v4192_v10  ;;  %v4193_v11 = vunpack.i.l.bf16 %v4192_v10 }
 0x817   :  { %v4005_v12 = vpack.c.bf16 %v4194_v7, %v4193_v11  ;;  %v3440_v7 = vld [vmem:[#allocation8 + $0x1] ss:$0 sm:$0xff] }
 0x819   :  { %4006 = vmatprep.subr.bf16.mxu1 %v4005_v12 }
 0x81b   :  { %v4288_v13 = vpop.eup %4287 }
 0x81c   :  { %v4290_v16 = vpop.eup %4289  ;;  %v1397_v17 = vmul.f32 %v4288_v13, %v4286_v2 }
 0x81d   :  { %v1399_v18 = vmul.f32 %v4290_v16, %v4284_v61  ;;  %v3435_v61 = vld [vmem:[%s5150_s4 + $0x1] ss:$0 sm:$0xff] }
 0x853   :  { %v3743_v14 = vpop.f32.mrb[10].mxu1 }
 0x854   :  { %v1193_v15 = vpop.f32.mrb[11].mxu1 }
 0x855   :  { %3746 = vmatprep.mubr.msk.f32.mxu1 %vm436_vm1, %v1193_v15 }
 0x856   :  { %3747 = vmatmul.mubr.msk.f32.vlgmr.msra.gmra.mrb[6].mxu1 %vm436_vm1, %v3743_v14 }
 0x857   :  { %4008 = vmatpush3.bf16.msra.mxu1 %v4005_v12  ;;  %3760 = vmatprep.mubr.msk.f32.mxu1 %vm526_vm5, %v1397_v17 }
 0x858   :  { %3763 = vmatprep.subr.mxu1 %v427_v59 }
 0x85a   :  { %3761 = vmatmul.mubr.msk.f32.vlgmr.msra.gmra.mrb[12].mxu1 %vm526_vm5, %v1399_v18 }
 0x85b   :  { %3764 = vmatpush3.msra.mxu1 %v427_v59 }
 0x85c   :  { %4018 = vmatprep.subr.bf16.mxu1 %v4017_v32 }
 0x92d   :  { %v3762_v19 = vpop.f32.mrb[12].mxu1 }
 0x92e   :  { %v1478_v20 = vpop.f32.mrb[13].mxu1 }
 0x92f   :  { %3765 = vmatprep.mubr.msk.f32.mxu1 %vm436_vm1, %v1478_v20 }
 0x930   :  { %3766 = vmatmul.mubr.msk.f32.vlgmr.msra.gmra.mrb[6].mxu1 %vm436_vm1, %v3762_v19 }
 0x931   :  { %4020 = vmatpush3.bf16.msra.mxu1 %v4017_v32  ;;  %3787 = vmatprep.mubr.msk.f32.mxu1 %vm121_vm0, %v107_v9 }
 0x932   :  { %4022 = vmatprep.subr.bf16.mxu1 %v4021_v43 }
 0x935   :  { %4024 = vmatpush3.bf16.msra.mxu1 %v4021_v43 }
 0x938   :  { %3788 = vmatmul.mubr.msk.f32.vlgmr.msra.gmra.mrb[14].mxu1 %vm121_vm0, %v4849_v44 }
 0x939   :  { %3790 = vmatprep.mubr.msk.f32.mxu1 %vm121_vm0, %v4856_v45 }
 0x93c   :  { %3791 = vmatmul.mubr.msk.f32.gmra.mrb[16].mxu1 %vm121_vm0, %v4863_v46 }
 0xa03   :  { %v3767_v22 = vpop.f32.mrb[6].mxu1 }
 0xa04   :  { %v4137_v23 = vadd.f32 %v3767_v22, %v3402_v21  ;;  %v1559_v24 = vpop.f32.mrb[7].mxu1 }
 0xa05   :  { %v4138_v25 = vadd.f32 %v3402_v21, %v1559_v24 }
 0xa06   :  { %v4829_v26 = vadd.f32 %v4137_v23, %v4664_v1 }
 0xa07   :  { %v4832_v27 = vadd.f32 %v4138_v25, %v4659_v0 }
 0xa08   :  { %v1577_v28 = vsel %vm121_vm0, %v4829_v26, 0.0 }
 0xa09   :  { %1578 = vadd.xlane.f32.xlu1 %v1577_v28  ;;  %v1574_v29 = vsel %vm121_vm0, %v4832_v27, 0.0  ;;  %v3437_v28 = vld [vmem:[#allocation8] ss:$0 sm:$0xff] }
 0xa0a   :  { %1575 = vadd.xlane.f32.xlu0 %v1574_v29 }
 0xa0b   :  { %v3789_v11 = vpop.f32.mrb[14].mxu1 }
 0xa0c   :  { %v1796_v12 = vadd.f32 %v3789_v11, %v3440_v7  ;;  %v1790_v13 = vpop.f32.mrb[15].mxu1 }
 0xa0d   :  { %v1791_v14 = vadd.f32 %v3440_v7, %v1790_v13 }
 0xa0f   :  { %v4876_v15 = vpack.i.bf16 %v1796_v12, %v1791_v14  ;;  %v4033_v16 = vpack.c.bf16 %v1796_v12, %v1791_v14  ;;  %v3792_v17 = vpop.f32.mrb[16].mxu1 }
 0xa10   :  { %v1806_v59 = vadd.f32 %v3792_v17, %v3440_v7  ;;  %v1800_v18 = vpop.f32.mrb[17].mxu1 }
 0xa11   :  { %4035 = vmatprep.subr.msk.bf16.mxu1 %vm4705_vm2, %v4033_v16  ;;  %v1801_v19 = vadd.f32 %v3440_v7, %v1800_v18 }
 0xa12   :  { %4038 = vmatpush3.bf16.xpose.msk.msra.mxu1 %vm4705_vm2, %v4033_v16 }
 0xa13   :  { %v4884_v20 = vpack.i.bf16 %v1806_v59, %v1801_v19  ;;  %v4039_v21 = vpack.c.bf16 %v1806_v59, %v1801_v19 }
 0xa15   :  { %4041 = vmatprep.subr.msk.bf16.mxu1 %vm4705_vm2, %v4039_v21 }
 0xa1a   :  { %4201 = vrot.lane.b32.xlu1 %v4884_v20, %s4501_s2  ;;  %4044 = vmatpush3.bf16.xpose.msk.msra.mxu1 %vm4705_vm2, %v4039_v21 }
 0xa96   :  { %v1579_v33 = vpop.xlane.xlu1 %1578 }
 0xa97   :  { %v1581_v34 = vmul.f32 0.03125, %v1579_v33  ;;  %v1576_v1 = vpop.xlane.xlu0 %1575 }
 0xa98   :  { %v1580_v35 = vmul.f32 0.03125, %v1576_v1 }
 0xa99   :  { %v1583_v0 = vsub.f32 %v4829_v26, %v1581_v34 }
 0xa9a   :  { %v1582_v36 = vsub.f32 %v4832_v27, %v1580_v35  ;;  %v4202_v29 = vpop.permute.xlu1 %4201 }
 0xa9b   :  { %v1585_v39 = vmul.f32 %v1583_v0, %v1583_v0  ;;  %v4204_v33 = vunpack.i.h.bf16 %v4202_v29  ;;  %v4203_v34 = vunpack.i.l.bf16 %v4202_v29 }
 0xa9c   :  { %v1584_v37 = vmul.f32 %v1582_v36, %v1582_v36 }
 0xa9d   :  { %v1589_v40 = vsel %vm121_vm0, %v1585_v39, 0.0  ;;  %v1812_v39 = vld [vmem:[#allocation7 + $0x50] sm:$0xff] }
 0xa9e   :  { %v1586_v38 = vsel %vm121_vm0, %v1584_v37, 0.0  ;;  %v1810_v37 = vld [vmem:[#allocation7 + $0x40] sm:$0xff]  ;;  %v4029_v42 = vpack.c.bf16 %v1813_v41, %v1812_v39 }
 0xa9f   :  { %1587 = vadd.xlane.f32.xlu0 %v1586_v38  ;;  %v1811_v38 = vld [vmem:[#allocation7 + $0x48] sm:$0xff]  ;;  %v1905_v41 = vld [vmem:[#allocation7 + $0x60] sm:$0xff] }
 0xaa3   :  { %1590 = vadd.xlane.f32.xlu0 %v1589_v40  ;;  %v4025_v40 = vpack.c.bf16 %v1811_v38, %v1810_v37 }
 0xaa5   :  { %4026 = vmatprep.subr.bf16.mxu0 %v4025_v40 }
 0xab9   :  { %4196 = vrot.lane.b32.xlu0 %v4876_v15, %s4501_s2 }
 0xb2c   :  { %v1588_v52 = vpop.xlane.xlu0 %1587 }
 0xb2d   :  { %v1592_v53 = vmul.f32 0.03125, %v1588_v52 }
 0xb2f   :  { %v1594_v54 = vadd.f32 1e-06, %v1592_v53 }
 0xb30   :  { %v1591_v55 = vpop.xlane.xlu0 %1590 }
 0xb31   :  { %4291 = vrsqrt.f32 %v1594_v54  ;;  %v1593_v56 = vmul.f32 0.03125, %v1591_v55 }
 0xb33   :  { %v1595_v58 = vadd.f32 1e-06, %v1593_v56 }
 0xb34   :  { %v4197_v22 = vpop.permute.xlu0 %4196 }
 0xb35   :  { %4293 = vrsqrt.f32 %v1595_v58  ;;  %v4199_v23 = vunpack.i.h.bf16 %v4197_v22  ;;  %v4198_v24 = vunpack.i.l.bf16 %v4197_v22 }
 0xb37   :  { %v4053_v25 = vpack.c.bf16 %v4199_v23, %v4198_v24 }
 0xb39   :  { %4055 = vmatprep.subr.msk.bf16.mxu1 %vm4705_vm2, %v4053_v25 }
 0xb3b   :  { %v4292_v60 = vpop.eup %4291 }
 0xb3c   :  { %v1598_v62 = vmul.f32 %v4292_v60, %v1582_v36  ;;  %v4059_v36 = vpack.c.bf16 %v4204_v33, %v4203_v34 }
 0xb3e   :  { %v1604_v2 = vmul.f32 %v3435_v61, %v1598_v62 }
 0xb3f   :  { %v4294_v4 = vpop.eup %4293 }
 0xb40   :  { %v1599_v5 = vmul.f32 %v4294_v4, %v1583_v0  ;;  %v1610_v6 = vadd.f32 %v3436_v63, %v1604_v2  ;;  %v3445_v2 = vld [vmem:[#allocation8 + $0x2] ss:$0 sm:$0xff] }
 0xb42   :  { %v1605_v57 = vmul.f32 %v3435_v61, %v1599_v5  ;;  %3776 = vmatprep.mubr.msk.f32.mxu0 %vm121_vm0, %v1610_v6 }
 0xb44   :  { %v1611_v10 = vadd.f32 %v3436_v63, %v1605_v57 }
 0xb46   :  { %3777 = vmatmul.mubr.msk.f32.vlgmr.msra.gmra.mrb[10].mxu0 %vm121_vm0, %v1611_v10 }
 0xb47   :  { %3801 = vmatprep.mubr.msk.f32.mxu0 %vm121_vm0, %v107_v9  ;;  %4028 = vmatpush3.bf16.msra.mxu0 %v4025_v40 }
 0xb48   :  { %4030 = vmatprep.subr.bf16.mxu0 %v4029_v42 }
 0xb4b   :  { %4032 = vmatpush3.bf16.msra.mxu0 %v4029_v42 }
 0xb4e   :  { %3802 = vmatmul.mubr.msk.f32.vlgmr.msra.gmra.mrb[12].mxu0 %vm121_vm0, %v4849_v44 }
 0xb4f   :  { %3804 = vmatprep.mubr.msk.f32.mxu0 %vm121_vm0, %v4856_v45 }
 0xb52   :  { %3805 = vmatmul.mubr.msk.f32.gmra.mrb[14].mxu0 %vm121_vm0, %v4863_v46 }
 0xc19   :  { %v3778_v30 = vpop.f32.mrb[10].mxu0 }
 0xc1a   :  { %v1699_v31 = vadd.f32 %v3778_v30, %v3437_v28  ;;  %v1693_v32 = vpop.f32.mrb[11].mxu0 }
 0xc1b   :  { %v1694_v1 = vadd.f32 %v3437_v28, %v1693_v32 }
 0xc1c   :  { %v4894_v35 = vmul.f32 0.35355338, %v1699_v31 }
 0xc1d   :  { %v4896_v0 = vmul.f32 0.35355338, %v1694_v1 }
 0xc1e   :  { %2200 = vrot.lane.b32.xlu1 %v4894_v35, %s4501_s2 }
 0xc1f   :  { %2198 = vrot.lane.b32.xlu0 %v4896_v0, %s4501_s2  ;;  %3815 = vmatprep.mubr.msk.f32.mxu1 %vm436_vm1, %v4896_v0 }
 0xc20   :  { %3816 = vmatmul.mubr.msk.f32.vlgmr.msra.gmra.mrb[18].mxu1 %vm436_vm1, %v4894_v35 }
 0xc21   :  { %4058 = vmatpush3.bf16.xpose.msk.msra.mxu1 %vm4705_vm2, %v4053_v25  ;;  %v3803_v63 = vpop.f32.mrb[12].mxu0 }
 0xc22   :  { %4061 = vmatprep.subr.msk.bf16.mxu1 %vm4705_vm2, %v4059_v36  ;;  %v1885_v4 = vpop.f32.mrb[13].mxu0  ;;  %v1891_v59 = vadd.f32 %v3803_v63, %v3445_v2 }
 0xc23   :  { %v1886_v18 = vadd.f32 %v3445_v2, %v1885_v4 }
 0xc25   :  { %v3806_v5 = vpop.f32.mrb[14].mxu0  ;;  %v4045_v19 = vpack.c.bf16 %v1891_v59, %v1886_v18  ;;  %v4942_v21 = vpack.i.bf16 %v1891_v59, %v1886_v18 }
 0xc26   :  { %v1901_v6 = vadd.f32 %v3806_v5, %v3445_v2  ;;  %v1895_v57 = vpop.f32.mrb[15].mxu0 }
 0xc27   :  { %v1896_v10 = vadd.f32 %v3445_v2, %v1895_v57  ;;  %4046 = vmatprep.subr.bf16.mxu0 %v4045_v19 }
 0xc28   :  { %4048 = vmatpush3.bf16.msra.mxu0 %v4045_v19 }
 0xc29   :  { %4064 = vmatpush3.bf16.xpose.msk.msra.mxu1 %vm4705_vm2, %v4059_v36  ;;  %v4935_v7 = vpack.i.bf16 %v1901_v6, %v1896_v10  ;;  %v4049_v22 = vpack.c.bf16 %v1901_v6, %v1896_v10 }
 0xc2b   :  { %4050 = vmatprep.subr.bf16.mxu0 %v4049_v22 }
 0xc2c   :  { %4052 = vmatpush3.bf16.msra.mxu0 %v4049_v22 }
 0xc2d   :  { %3829 = vmatprep.subr.mxu0 %v1905_v41 }
 0xc90   :  { %v2201_v9 = vpop.permute.xlu1 %2200 }
 0xc91   :  { %v2199_v43 = vpop.permute.xlu0 %2198 }
 0xc92   :  { %3842 = vmatprep.mubr.msk.f32.mxu1 %vm436_vm1, %v2199_v43 }
 0xc93   :  { %3843 = vmatmul.mubr.msk.f32.vlgmr.msra.gmra.mrb[20].mxu1 %vm436_vm1, %v2201_v9 }
 0xcf3   :  { %v3817_v44 = vpop.f32.mrb[18].mxu1 }
 0xcf4   :  { %v2011_v45 = vsel %vm118_vm6, -1e+18, %v3817_v44  ;;  %v2001_v8 = vpop.f32.mrb[19].mxu1 }
 0xcf5   :  { %v2010_v46 = vsel %vm117_vm7, -1e+18, %v2001_v8  ;;  %v2015_v49 = vsel %vm121_vm0, %v2011_v45, -inf }
 0xcf6   :  { %2016 = vmax.xlane.f32.xlu1 %v2015_v49  ;;  %v2012_v50 = vsel %vm121_vm0, %v2010_v46, -inf }
 0xcf7   :  { %2013 = vmax.xlane.f32.xlu0 %v2012_v50 }
 0xd66   :  { %v3844_v51 = vpop.f32.mrb[20].mxu1 }
 0xd67   :  { %v2298_v52 = vsel %vm118_vm6, -1e+18, %v3844_v51  ;;  %v2288_v53 = vpop.f32.mrb[21].mxu1 }
 0xd68   :  { %v2302_v54 = vsel %vm121_vm0, %v2298_v52, -inf  ;;  %v2297_v16 = vsel %vm117_vm7, -1e+18, %v2288_v53 }
 0xd69   :  { %2303 = vmax.xlane.f32.xlu1 %v2302_v54  ;;  %v2299_v17 = vsel %vm121_vm0, %v2297_v16, -inf }
 0xd83   :  { %v2017_v55 = vpop.xlane.xlu1 %2016 }
 0xd84   :  { %v2019_v56 = vsub.f32 %v2011_v45, %v2017_v55  ;;  %v2014_v58 = vpop.xlane.xlu0 %2013 }
 0xd85   :  { %v2018_v60 = vsub.f32 %v2010_v46, %v2014_v58 }
 0xd86   :  { %v2022_v61 = vmul.f32 1.442695, %v2019_v56 }
 0xd87   :  { %v2020_v62 = vmul.f32 1.442695, %v2018_v60  ;;  %v1906_v60 = vld [vmem:[#allocation7 + $0x68] sm:$0xff] }
 0xd89   :  { %4295 = vpow2.f32 %v2020_v62 }
 0xd8a   :  { %4297 = vpow2.f32 %v2022_v61 }
 0xd93   :  { %v4296_v11 = vpop.eup %4295 }
 0xd94   :  { %v2024_v12 = vsel %vm121_vm0, %v4296_v11, 0.0  ;;  %v4298_v13 = vpop.eup %4297 }
 0xd95   :  { %2025 = vadd.xlane.f32.xlu0 %v2024_v12  ;;  %v2027_v14 = vsel %vm121_vm0, %v4298_v13, 0.0 }
 0xd99   :  { %2028 = vadd.xlane.f32.xlu0 %v2027_v14 }
 0xd9d   :  { %2300 = vmax.xlane.f32.xlu0 %v2299_v17 }
 0xdf6   :  { %v2304_v23 = vpop.xlane.xlu1 %2303 }
 0xdf7   :  { %v2306_v24 = vsub.f32 %v2298_v52, %v2304_v23 }
 0xdf9   :  { %v2309_v25 = vmul.f32 1.442695, %v2306_v24 }
 0xdfb   :  { %4299 = vpow2.f32 %v2309_v25 }
 0xe05   :  { %v4300_v28 = vpop.eup %4299 }
 0xe06   :  { %v2314_v29 = vsel %vm121_vm0, %v4300_v28, 0.0 }
 0xe07   :  { %2315 = vadd.xlane.f32.xlu1 %v2314_v29 }
 0xe18   :  { %4211 = vrot.lane.b32.xlu1 %v4935_v7, %s4501_s2 }
 0xe1c   :  { %4216 = vrot.lane.b32.xlu1 %v4876_v15, %s4502_s3 }
 0xe20   :  { %4221 = vrot.lane.b32.xlu1 %v4884_v20, %s4502_s3 }
 0xe22   :  { %v2026_v30 = vpop.xlane.xlu0 %2025 }
 0xe23   :  { %4301 = vrcp.f32 %v2026_v30 }
 0xe24   :  { %2503 = vrot.lane.b32.xlu1 %v4894_v35, %s4502_s3 }
 0xe26   :  { %v2029_v31 = vpop.xlane.xlu0 %2028 }
 0xe27   :  { %4303 = vrcp.f32 %v2029_v31 }
 0xe2a   :  { %v2301_v32 = vpop.xlane.xlu0 %2300 }
 0xe2b   :  { %v2305_v33 = vsub.f32 %v2297_v16, %v2301_v32 }
 0xe2d   :  { %v4302_v34 = vpop.eup %4301  ;;  %v2307_v1 = vmul.f32 1.442695, %v2305_v33 }
 0xe2e   :  { %v2031_v36 = vmul.f32 %v4302_v34, %v4296_v11 }
 0xe2f   :  { %4305 = vpow2.f32 %v2307_v1 }
 0xe30   :  { %3826 = vmatprep.mubr.msk.f32.mxu0 %vm121_vm0, %v2031_v36  ;;  %3099 = vst.msk [vmem:[#allocation11] sm:$0xff] %vm526_vm5, %v2031_v36 }
 0xe31   :  { %v4304_v37 = vpop.eup %4303 }
 0xe32   :  { %v4955_v38 = vmul.f32 %v4304_v37, %v4298_v13 }
 0xe34   :  { %3827 = vmatmul.mubr.msk.f32.vlgmr.msra.gmra.mrb[16].mxu0 %vm121_vm0, %v4955_v38 }
 0xe35   :  { %3830 = vmatpush3.msra.mxu0 %v1905_v41 }
 0xe39   :  { %v4306_v39 = vpop.eup %4305 }
 0xe3a   :  { %v2311_v40 = vsel %vm121_vm0, %v4306_v39, 0.0 }
 0xe3b   :  { %2312 = vadd.xlane.f32.xlu0 %v2311_v40 }
 0xe51   :  { %4206 = vrot.lane.b32.xlu0 %v4942_v21, %s4501_s2 }
 0xe55   :  { %2501 = vrot.lane.b32.xlu0 %v4896_v0, %s4502_s3 }
 0xe94   :  { %v2316_v8 = vpop.xlane.xlu1 %2315 }
 0xe98   :  { %v4212_v46 = vpop.permute.xlu1 %4211 }
 0xe99   :  { %v4214_v50 = vunpack.i.h.bf16 %v4212_v46  ;;  %v4213_v51 = vunpack.i.l.bf16 %v4212_v46 }
 0xe9b   :  { %v4069_v55 = vpack.c.bf16 %v4214_v50, %v4213_v51 }
 0xe9c   :  { %v4217_v56 = vpop.permute.xlu1 %4216 }
 0xe9d   :  { %v4219_v61 = vunpack.i.h.bf16 %v4217_v56  ;;  %v4218_v62 = vunpack.i.l.bf16 %v4217_v56 }
 0xe9f   :  { %v4073_v2 = vpack.c.bf16 %v4219_v61, %v4218_v62 }
 0xea0   :  { %v4222_v4 = vpop.permute.xlu1 %4221 }
 0xea1   :  { %v4224_v5 = vunpack.i.h.bf16 %v4222_v4  ;;  %v4223_v6 = vunpack.i.l.bf16 %v4222_v4 }
 0xea3   :  { %v4079_v11 = vpack.c.bf16 %v4224_v5, %v4223_v6 }
 0xea4   :  { %v2504_v13 = vpop.permute.xlu1 %2503 }
 0xec8   :  { %v2313_v42 = vpop.xlane.xlu0 %2312 }
 0xec9   :  { %4307 = vrcp.f32 %v2313_v42 }
 0xeca   :  { %4309 = vrcp.f32 %v2316_v8 }
 0xecc   :  { %v4207_v43 = vpop.permute.xlu0 %4206 }
 0xecd   :  { %v4209_v9 = vunpack.i.h.bf16 %v4207_v43  ;;  %v4208_v44 = vunpack.i.l.bf16 %v4207_v43 }
 0xecf   :  { %v4065_v45 = vpack.c.bf16 %v4209_v9, %v4208_v44 }
 0xed0   :  { %v2502_v12 = vpop.permute.xlu0 %2501 }
 0xed1   :  { %4066 = vmatprep.subr.bf16.mxu0 %v4065_v45 }
 0xed3   :  { %v4308_v49 = vpop.eup %4307 }
 0xed4   :  { %v2318_v54 = vmul.f32 %v4308_v49, %v4306_v39  ;;  %v4310_v58 = vpop.eup %4309 }
 0xed5   :  { %v2320_v63 = vmul.f32 %v4310_v58, %v4300_v28 }
 0xf07   :  { %v3828_v52 = vpop.f32.mrb[16].mxu0 }
 0xf08   :  { %v2106_v53 = vpop.f32.mrb[17].mxu0 }
 0xf09   :  { %3831 = vmatprep.mubr.msk.f32.mxu0 %vm436_vm1, %v2106_v53 }
 0xf0a   :  { %3832 = vmatmul.mubr.msk.f32.vlgmr.msra.gmra.mrb[18].mxu0 %vm436_vm1, %v3828_v52 }
 0xf0b   :  { %4068 = vmatpush3.bf16.msra.mxu0 %v4065_v45  ;;  %3853 = vmatprep.mubr.msk.f32.mxu0 %vm121_vm0, %v2318_v54 }
 0xf0c   :  { %4070 = vmatprep.subr.bf16.mxu0 %v4069_v55 }
 0xf0f   :  { %4072 = vmatpush3.bf16.msra.mxu0 %v4069_v55  ;;  %v1907_v55 = vld [vmem:[#allocation7 + $0x70] sm:$0xff] }
 0xf10   :  { %3856 = vmatprep.subr.mxu0 %v1906_v60 }
 0xf12   :  { %3854 = vmatmul.mubr.msk.f32.vlgmr.msra.gmra.mrb[20].mxu0 %vm121_vm0, %v2320_v63 }
 0xf13   :  { %3857 = vmatpush3.msra.mxu0 %v1906_v60 }
 0xf14   :  { %4075 = vmatprep.subr.msk.bf16.mxu0 %vm4705_vm2, %v4073_v2 }
 0xfe5   :  { %v3855_v57 = vpop.f32.mrb[20].mxu0 }
 0xfe6   :  { %v2409_v10 = vpop.f32.mrb[21].mxu0 }
 0xfe7   :  { %3858 = vmatprep.mubr.msk.f32.mxu0 %vm436_vm1, %v2409_v10 }
 0xfe8   :  { %3859 = vmatmul.mubr.msk.f32.vlgmr.msra.gmra.mrb[18].mxu0 %vm436_vm1, %v3855_v57 }
 0xfe9   :  { %4078 = vmatpush3.bf16.xpose.msk.msra.mxu0 %vm4705_vm2, %v4073_v2  ;;  %3869 = vmatprep.mubr.msk.f32.mxu0 %vm436_vm1, %v2502_v12 }
 0xfea   :  { %4081 = vmatprep.subr.msk.bf16.mxu0 %vm4705_vm2, %v4079_v11 }
 0xff1   :  { %4084 = vmatpush3.bf16.xpose.msk.msra.mxu0 %vm4705_vm2, %v4079_v11 }
 0xff2   :  { %3883 = vmatprep.subr.mxu0 %v1907_v55 }
 0xff8   :  { %3870 = vmatmul.mubr.msk.f32.vlgmr.msra.gmra.mrb[22].mxu0 %vm436_vm1, %v2504_v13 }
 0xff9   :  { %3884 = vmatpush3.msra.mxu0 %v1907_v55 }
0x10cb   :  { %v3871_v14 = vpop.f32.mrb[22].mxu0 }
0x10cc   :  { %v2601_v16 = vsel %vm118_vm6, -1e+18, %v3871_v14  ;;  %v2591_v17 = vpop.f32.mrb[23].mxu0 }
0x10cd   :  { %v2600_v59 = vsel %vm117_vm7, -1e+18, %v2591_v17  ;;  %v2605_v18 = vsel %vm121_vm0, %v2601_v16, -inf }
0x10ce   :  { %2606 = vmax.xlane.f32.xlu1 %v2605_v18  ;;  %v2602_v19 = vsel %vm121_vm0, %v2600_v59, -inf }
0x10cf   :  { %2603 = vmax.xlane.f32.xlu0 %v2602_v19 }
0x10df   :  { %4231 = vrot.lane.b32.xlu1 %v4935_v7, %s4502_s3 }
0x10e3   :  { %4236 = vrot.lane.b32.xlu1 %v4876_v15, %s4503_s24 }
0x10e7   :  { %4241 = vrot.lane.b32.xlu1 %v4884_v20, %s4503_s24 }
0x10eb   :  { %2802 = vrot.lane.b32.xlu1 %v4894_v35, %s4503_s24 }
0x115b   :  { %v2607_v22 = vpop.xlane.xlu1 %2606 }
0x115c   :  { %v2609_v23 = vsub.f32 %v2601_v16, %v2607_v22  ;;  %v2604_v24 = vpop.xlane.xlu0 %2603 }
0x115d   :  { %v2608_v25 = vsub.f32 %v2600_v59, %v2604_v24 }
0x115e   :  { %v2612_v28 = vmul.f32 1.442695, %v2609_v23 }
0x115f   :  { %v2610_v29 = vmul.f32 1.442695, %v2608_v25  ;;  %v4232_v35 = vpop.permute.xlu1 %4231 }
0x1160   :  { %4311 = vpow2.f32 %v2612_v28  ;;  %v4234_v1 = vunpack.i.h.bf16 %v4232_v35  ;;  %v4233_v36 = vunpack.i.l.bf16 %v4232_v35 }
0x1161   :  { %4313 = vpow2.f32 %v2610_v29 }
0x1162   :  { %v4089_v42 = vpack.c.bf16 %v4234_v1, %v4233_v36 }
0x1163   :  { %v4237_v40 = vpop.permute.xlu1 %4236 }
0x1164   :  { %v4239_v43 = vunpack.i.h.bf16 %v4237_v40  ;;  %v4238_v9 = vunpack.i.l.bf16 %v4237_v40 }
0x1166   :  { %v4093_v8 = vpack.c.bf16 %v4239_v43, %v4238_v9 }
0x1167   :  { %v4242_v46 = vpop.permute.xlu1 %4241 }
0x1168   :  { %v4244_v51 = vunpack.i.h.bf16 %v4242_v46  ;;  %v4243_v52 = vunpack.i.l.bf16 %v4242_v46  ;;  %v3147_v46 = vld [vmem:[%s5156_s10 + $0x8] sm:$0xff] }
0x116a   :  { %v4312_v30 = vpop.eup %4311  ;;  %v4099_v53 = vpack.c.bf16 %v4244_v51, %v4243_v52  ;;  %v3149_v51 = vld [vmem:[%s5156_s10 + $0x18] sm:$0xff]  ;;  %v3240_v52 = vld [vmem:[%s5158_s12] sm:$0xff] }
0x116b   :  { %v2617_v31 = vsel %vm121_vm0, %v4312_v30, 0.0  ;;  %v4314_v32 = vpop.eup %4313  ;;  %v2803_v54 = vpop.permute.xlu1 %2802 }
0x116c   :  { %2618 = vadd.xlane.f32.xlu0 %v2617_v31  ;;  %v2614_v15 = vsel %vm121_vm0, %v4314_v32, 0.0 }
0x1170   :  { %2615 = vadd.xlane.f32.xlu0 %v2614_v15  ;;  %v3450_v15 = vld [vmem:[#allocation8 + $0x3] ss:$0 sm:$0xff] }
0x1186   :  { %4226 = vrot.lane.b32.xlu0 %v4942_v21, %s4502_s3 }
0x118a   :  { %2800 = vrot.lane.b32.xlu0 %v4896_v0, %s4503_s24 }
0x11f9   :  { %v2619_v20 = vpop.xlane.xlu0 %2618 }
0x11fd   :  { %v2616_v33 = vpop.xlane.xlu0 %2615 }
0x11fe   :  { %4315 = vrcp.f32 %v2616_v33 }
0x11ff   :  { %4317 = vrcp.f32 %v2619_v20 }
0x1201   :  { %v4227_v34 = vpop.permute.xlu0 %4226 }
0x1202   :  { %v4229_v37 = vunpack.i.h.bf16 %v4227_v34  ;;  %v4228_v39 = vunpack.i.l.bf16 %v4227_v34 }
0x1204   :  { %v4085_v41 = vpack.c.bf16 %v4229_v37, %v4228_v39 }
0x1205   :  { %v2801_v50 = vpop.permute.xlu0 %2800 }
0x1206   :  { %4086 = vmatprep.subr.bf16.mxu1 %v4085_v41 }
0x1207   :  { %4088 = vmatpush3.bf16.msra.mxu1 %v4085_v41 }
0x1208   :  { %v4316_v44 = vpop.eup %4315  ;;  %4090 = vmatprep.subr.bf16.mxu1 %v4089_v42 }
0x1209   :  { %v4318_v0 = vpop.eup %4317  ;;  %v2621_v45 = vmul.f32 %v4316_v44, %v4314_v32 }
0x120a   :  { %v2623_v49 = vmul.f32 %v4318_v0, %v4312_v30  ;;  %v1908_v30 = vld [vmem:[#allocation7 + $0x78] sm:$0xff] }
0x120b   :  { %4092 = vmatpush3.bf16.msra.mxu1 %v4089_v42  ;;  %3880 = vmatprep.mubr.msk.f32.mxu1 %vm121_vm0, %v2621_v45 }
0x120c   :  { %4095 = vmatprep.subr.msk.bf16.mxu1 %vm4705_vm2, %v4093_v8 }
0x120e   :  { %3881 = vmatmul.mubr.msk.f32.vlgmr.msra.gmra.mrb[22].mxu1 %vm121_vm0, %v2623_v49 }
0x120f   :  { %3896 = vmatprep.mubr.msk.f32.mxu1 %vm436_vm1, %v2801_v50  ;;  %v3148_v50 = vld [vmem:[%s5156_s10 + $0x10] sm:$0xff] }
0x1214   :  { %4098 = vmatpush3.bf16.xpose.msk.msra.mxu1 %vm4705_vm2, %v4093_v8  ;;  %v3146_v8 = vld [vmem:[%s5156_s10] sm:$0xff] }
0x1215   :  { %4101 = vmatprep.subr.msk.bf16.mxu1 %vm4705_vm2, %v4099_v53  ;;  %v4113_v49 = vpack.c.bf16 %v3147_v46, %v3146_v8 }
0x121c   :  { %4104 = vmatpush3.bf16.xpose.msk.msra.mxu1 %vm4705_vm2, %v4099_v53  ;;  %v3241_v53 = vld [vmem:[%s5158_s12 + $0x8] sm:$0xff] }
0x121d   :  { %4114 = vmatprep.subr.bf16.mxu1 %v4113_v49  ;;  %v4121_v55 = vpack.c.bf16 %v3241_v53, %v3240_v52 }
0x1223   :  { %3897 = vmatmul.mubr.msk.f32.vlgmr.msra.gmra.mrb[24].mxu1 %vm436_vm1, %v2803_v54  ;;  %v3242_v54 = vld [vmem:[%s5158_s12 + $0x10] sm:$0xff] }
0x1224   :  { %4116 = vmatpush3.bf16.msra.mxu1 %v4113_v49 }
0x12e1   :  { %v3882_v56 = vpop.f32.mrb[22].mxu1 }
0x12e2   :  { %v2708_v58 = vpop.f32.mrb[23].mxu1 }
0x12e3   :  { %3885 = vmatprep.mubr.msk.f32.mxu0 %vm436_vm1, %v2708_v58 }
0x12e4   :  { %3886 = vmatmul.mubr.msk.f32.vlgmr.msra.gmra.mrb[18].mxu0 %vm436_vm1, %v3882_v56  ;;  %v3243_v56 = vld [vmem:[%s5158_s12 + $0x18] sm:$0xff] }
0x12e5   :  { %v4125_v58 = vpack.c.bf16 %v3243_v56, %v3242_v54 }
0x12f6   :  { %v3898_v60 = vpop.f32.mrb[24].mxu1 }
0x12f7   :  { %v2900_v61 = vsel %vm118_vm6, -1e+18, %v3898_v60  ;;  %v2890_v62 = vpop.f32.mrb[25].mxu1  ;;  %v3244_v60 = vld [vmem:[%s5158_s12 + $0x20] sm:$0xff] }
0x12f8   :  { %v2899_v3 = vsel %vm117_vm7, -1e+18, %v2890_v62  ;;  %v2904_v63 = vsel %vm121_vm0, %v2900_v61, -inf }
0x12f9   :  { %2905 = vmax.xlane.f32.xlu1 %v2904_v63  ;;  %v2901_v2 = vsel %vm121_vm0, %v2899_v3, -inf }
0x12fa   :  { %2902 = vmax.xlane.f32.xlu0 %v2901_v2 }
0x130a   :  { %4251 = vrot.lane.b32.xlu1 %v4935_v7, %s4503_s24 }
0x1386   :  { %v2906_v4 = vpop.xlane.xlu1 %2905 }
0x1387   :  { %v2908_v5 = vsub.f32 %v2900_v61, %v2906_v4  ;;  %v2903_v6 = vpop.xlane.xlu0 %2902  ;;  %v3245_v61 = vld [vmem:[%s5158_s12 + $0x28] sm:$0xff] }
0x1388   :  { %v2907_v57 = vsub.f32 %v2899_v3, %v2903_v6  ;;  %v4129_v62 = vpack.c.bf16 %v3245_v61, %v3244_v60 }
0x1389   :  { %v2911_v10 = vmul.f32 1.442695, %v2908_v5 }
0x138a   :  { %v2909_v47 = vmul.f32 1.442695, %v2907_v57  ;;  %v4252_v16 = vpop.permute.xlu1 %4251 }
0x138b   :  { %4319 = vpow2.f32 %v2911_v10  ;;  %v4254_v59 = vunpack.i.h.bf16 %v4252_v16  ;;  %v4253_v18 = vunpack.i.l.bf16 %v4252_v16 }
0x138c   :  { %4321 = vpow2.f32 %v2909_v47  ;;  %v3491_v47 = vld [vmem:[%s5150_s4 + $0x2] ss:$0 sm:$0xff] }
0x138d   :  { %v4109_v24 = vpack.c.bf16 %v4254_v59, %v4253_v18  ;;  %v3246_v59 = vld [vmem:[%s5158_s12 + $0x30] sm:$0xff]  ;;  %v3247_v18 = vld [vmem:[%s5158_s12 + $0x38] sm:$0xff] }
0x1395   :  { %v4320_v11 = vpop.eup %4319 }
0x1396   :  { %v2916_v48 = vsel %vm121_vm0, %v4320_v11, 0.0  ;;  %v4322_v12 = vpop.eup %4321 }
0x1397   :  { %2917 = vadd.xlane.f32.xlu0 %v2916_v48  ;;  %v2913_v13 = vsel %vm121_vm0, %v4322_v12, 0.0 }
0x139b   :  { %2914 = vadd.xlane.f32.xlu0 %v2913_v13  ;;  %v3492_v13 = vld [vmem:[%s5151_s5 + $0x2] ss:$0 sm:$0xff] }
0x13b1   :  { %4246 = vrot.lane.b32.xlu0 %v4942_v21, %s4503_s24 }
0x1424   :  { %v2918_v7 = vpop.xlane.xlu0 %2917 }
0x1428   :  { %v2915_v14 = vpop.xlane.xlu0 %2914 }
0x1429   :  { %4323 = vrcp.f32 %v2915_v14 }
0x142a   :  { %4325 = vrcp.f32 %v2918_v7 }
0x142c   :  { %v4247_v17 = vpop.permute.xlu0 %4246 }
0x142d   :  { %v4249_v19 = vunpack.i.h.bf16 %v4247_v17  ;;  %v4248_v22 = vunpack.i.l.bf16 %v4247_v17 }
0x142f   :  { %v4105_v23 = vpack.c.bf16 %v4249_v19, %v4248_v22  ;;  %v4133_v19 = vpack.c.bf16 %v3247_v18, %v3246_v59  ;;  %v3493_v22 = vld [vmem:[%s5157_s11] ss:$0 sm:$0xff] }
0x1431   :  { %4106 = vmatprep.subr.bf16.mxu0 %v4105_v23 }
0x1432   :  { %4108 = vmatpush3.bf16.msra.mxu0 %v4105_v23 }
0x1433   :  { %v4324_v25 = vpop.eup %4323  ;;  %4110 = vmatprep.subr.bf16.mxu0 %v4109_v24 }
0x1434   :  { %v4326_v28 = vpop.eup %4325  ;;  %v2920_v29 = vmul.f32 %v4324_v25, %v4322_v12 }
0x1435   :  { %v2922_v21 = vmul.f32 %v4326_v28, %v4320_v11 }
0x1436   :  { %4112 = vmatpush3.bf16.msra.mxu0 %v4109_v24  ;;  %3907 = vmatprep.mubr.msk.f32.mxu0 %vm121_vm0, %v2920_v29 }
0x1437   :  { %3910 = vmatprep.subr.mxu0 %v1908_v30 }
0x1439   :  { %3908 = vmatmul.mubr.msk.f32.vlgmr.msra.gmra.mrb[24].mxu0 %vm121_vm0, %v2922_v21 }
0x143a   :  { %3911 = vmatpush3.msra.mxu0 %v1908_v30 }
0x143b   :  { %4122 = vmatprep.subr.bf16.mxu0 %v4121_v55 }
0x150c   :  { %v3909_v31 = vpop.f32.mrb[24].mxu0 }
0x150d   :  { %v3007_v32 = vpop.f32.mrb[25].mxu0 }
0x150e   :  { %3912 = vmatprep.mubr.msk.f32.mxu0 %vm436_vm1, %v3007_v32 }
0x150f   :  { %3913 = vmatmul.mubr.msk.f32.vlgmr.msra.gmra.mrb[18].mxu0 %vm436_vm1, %v3909_v31 }
0x1510   :  { %4124 = vmatpush3.bf16.msra.mxu0 %v4121_v55 }
0x1511   :  { %4126 = vmatprep.subr.bf16.mxu0 %v4125_v58 }
0x1514   :  { %4128 = vmatpush3.bf16.msra.mxu0 %v4125_v58 }
0x1515   :  { %4130 = vmatprep.subr.bf16.mxu0 %v4129_v62 }
0x1518   :  { %4132 = vmatpush3.bf16.msra.mxu0 %v4129_v62 }
0x1519   :  { %4134 = vmatprep.subr.bf16.mxu0 %v4133_v19 }
0x151c   :  { %4136 = vmatpush3.bf16.msra.mxu0 %v4133_v19 }
0x15e2   :  { %v3914_v20 = vpop.f32.mrb[18].mxu0 }
0x15e3   :  { %v4139_v35 = vadd.f32 %v3914_v20, %v3450_v15  ;;  %v3088_v33 = vpop.f32.mrb[19].mxu0 }
0x15e4   :  { %v4140_v34 = vadd.f32 %v3450_v15, %v3088_v33 }
0x15e5   :  { %v5031_v1 = vadd.f32 %v4139_v35, %v4829_v26 }
0x15e6   :  { %v5034_v36 = vadd.f32 %v4140_v34, %v4832_v27 }
0x15e7   :  { %v3111_v37 = vsel %vm121_vm0, %v5031_v1, 0.0 }
0x15e8   :  { %3112 = vadd.xlane.f32.xlu0 %v3111_v37  ;;  %v3108_v39 = vsel %vm121_vm0, %v5034_v36, 0.0 }
0x15e9   :  { %3109 = vadd.xlane.f32.xlu1 %v3108_v39 }
0x1675   :  { %v3113_v40 = vpop.xlane.xlu0 %3112 }
0x1676   :  { %v3115_v41 = vmul.f32 0.03125, %v3113_v40  ;;  %v3110_v42 = vpop.xlane.xlu1 %3109 }
0x1677   :  { %v3114_v43 = vmul.f32 0.03125, %v3110_v42 }
0x1678   :  { %v3117_v9 = vsub.f32 %v5031_v1, %v3115_v41 }
0x1679   :  { %v3116_v26 = vsub.f32 %v5034_v36, %v3114_v43 }
0x167a   :  { %v3119_v44 = vmul.f32 %v3117_v9, %v3117_v9 }
0x167b   :  { %v3118_v0 = vmul.f32 %v3116_v26, %v3116_v26 }
0x167c   :  { %v3123_v27 = vsel %vm121_vm0, %v3119_v44, 0.0 }
0x167d   :  { %3124 = vadd.xlane.f32.xlu1 %v3123_v27  ;;  %v3120_v45 = vsel %vm121_vm0, %v3118_v0, 0.0 }
0x167e   :  { %3121 = vadd.xlane.f32.xlu0 %v3120_v45 }
0x1694   :  { %3100 = vrot.lane.b32.xlu0 %v4955_v38, %s4502_s3  ;;  %v4117_v38 = vpack.c.bf16 %v3149_v51, %v3148_v50  ;;  %s3358_s3 = sshll.u32 %s4504_s7, 4  ;;  %s3359_s3 = int_to_ptr.vmem [resolvable:$true] %s3358_s3 }
0x1695   :  { %s4419_s12 = scalar_lea.vmem %s3359_s3, 256  ;;  %p4424_p5 = scmp.lt.s32.totalorder %s3359_s3, %s3359_s3 }
0x1696   :  { %4118 = vmatprep.subr.bf16.mxu1 %v4117_v38  ;;  %p4420_p4 = scmp.ne.s32.totalorder %s3359_s3, %s4419_s12  ;;  %p4425_p6 = scmp.lt.s32.totalorder %s4419_s12, %s4419_s12 }
0x1697   :  { %4120 = vmatpush3.bf16.msra.mxu1 %v4117_v38 }
0x1698   :  { %p4426_p7 = por %p4425_p6, %p4424_p5 }
0x169a   :  { %p4427_p8 = pnand %p4426_p7, %p4420_p4 }
0x170a   :  { %v3125_v3 = vpop.xlane.xlu1 %3124 }
0x170b   :  { %v3127_v63 = vmul.f32 0.03125, %v3125_v3  ;;  %v3122_v2 = vpop.xlane.xlu0 %3121 }
0x170c   :  { %v3126_v4 = vmul.f32 0.03125, %v3122_v2 }
0x170d   :  { %v3129_v5 = vadd.f32 1e-06, %v3127_v63 }
0x170e   :  { %v3128_v6 = vadd.f32 1e-06, %v3126_v4 }
0x170f   :  { %4327 = vrsqrt.f32 %v3129_v5  ;;  %v3101_v57 = vpop.permute.xlu0 %3100 }
0x1710   :  { %4329 = vrsqrt.f32 %v3128_v6  ;;  %3103 = vst.msk [vmem:[#allocation11 + $0x8] sm:$0xff] %vm526_vm5, %v3101_v57 }
0x1719   :  { %v4328_v10 = vpop.eup %4327 }
0x171a   :  { %v4330_v11 = vpop.eup %4329  ;;  %v3133_v48 = vmul.f32 %v4328_v10, %v3117_v9 }
0x171b   :  { %v3132_v12 = vmul.f32 %v4330_v11, %v3116_v26 }
0x171c   :  { %v3139_v7 = vmul.f32 %v3491_v47, %v3133_v48 }
0x171d   :  { %v3138_v14 = vmul.f32 %v3491_v47, %v3132_v12 }
0x171e   :  { %v3145_v17 = vadd.f32 %v3492_v13, %v3139_v7 }
0x171f   :  { %v3144_v16 = vadd.f32 %v3492_v13, %v3138_v14 }
0x1721   :  { %3923 = vmatprep.mubr.msk.f32.mxu1 %vm121_vm0, %v3144_v16 }
0x1722   :  { %3924 = vmatmul.mubr.msk.f32.vlgmr.msra.gmra.mrb[26].mxu1 %vm121_vm0, %v3145_v17 }
0x17f5   :  { %v3925_v23 = vpop.f32.mrb[26].mxu1 }
0x17f6   :  { %v3235_v24 = vadd.f32 %v3925_v23, %v3493_v22  ;;  %v3229_v25 = vpop.f32.mrb[27].mxu1 }
0x17f7   :  { %v3230_v28 = vadd.f32 %v3493_v22, %v3229_v25 }
0x17f8   :  { %v3239_v30 = vmax.f32 %v3235_v24, 0.0 }
0x17f9   :  { %v3238_v29 = vmax.f32 %v3230_v28, 0.0 }
0x17fb   :  { %3942 = vmatprep.mubr.msk.f32.mxu0 %vm3255_vm8, %v3238_v29 }
0x17fc   :  { %3943 = vmatmul.mubr.msk.f32.vlgmr.msra.gmra.mrb[26].mxu0 %vm3255_vm8, %v3239_v30 }
0x17fd   :  { %4430 = shalt.err (!%p4427_p8)
}
0x17fe   :  { %s4431_s22 = scalar_lea.hbm %s5161_s15, 256 }
0x17ff   :  { %p4432_p9 = scmp.ne.s32.totalorder %s5161_s15, %s4431_s22  ;;  %p4435_p10 = scmp.lt.u32.totalorder %s4431_s22, %s5161_s15 }
0x1801   :  { %p4437_p11 = pnand %p4435_p10, %p4432_p9 }
0x1803   :  { %4440 = shalt.err (!%p4437_p11)
}
0x1804   :  { %3364 = dma.vmem_to_hbm [thread:$0]  %s3359_s3, 256, %s5161_s15, [#allocation12], %s4497_s18, %s4497_s18, %s4498_s19  }
0x1805   :  { %s4505_s1 = smov [#allocation13]  }
0x1806   :  { %s3370_s28 = sshll.u32 %s4505_s1, 4  ;;  %s3371_s28 = int_to_ptr.vmem [resolvable:$true] %s3370_s28 }
0x1807   :  { %s4441_s29 = scalar_lea.vmem %s3371_s28, 256  ;;  %p4446_p13 = scmp.lt.s32.totalorder %s3371_s28, %s3371_s28 }
0x1808   :  { %p4442_p12 = scmp.ne.s32.totalorder %s3371_s28, %s4441_s29  ;;  %p4447_p0 = scmp.lt.s32.totalorder %s4441_s29, %s4441_s29 }
0x180a   :  { %p4448_p1 = por %p4447_p0, %p4446_p13 }
0x180c   :  { %p4449_p2 = pnand %p4448_p1, %p4442_p12 }
0x180e   :  { %4452 = shalt.err (!%p4449_p2)
}
0x180f   :  { %s4453_s30 = scalar_lea.hbm %s5162_s16, 256 }
0x1810   :  { %p4454_p3 = scmp.ne.s32.totalorder %s5162_s16, %s4453_s30  ;;  %p4457_p4 = scmp.lt.u32.totalorder %s4453_s30, %s5162_s16 }
0x1812   :  { %p4459_p5 = pnand %p4457_p4, %p4454_p3 }
0x1814   :  { %4462 = shalt.err (!%p4459_p5)
}
0x1815   :  { %3376 = dma.vmem_to_hbm [thread:$0]  %s3371_s28, 256, %s5162_s16, [#allocation12], %s4497_s18, %s4497_s18, %s4498_s19  }
0x1816   :  { %v3496_v21 = vld [vmem:[%s5159_s13] ss:$0 sm:$0xff]  ;;  %s4506_s7 = smov [#allocation10]  }
0x1817   :  { %s3346_s3 = sshll.u32 %s4506_s7, 4  ;;  %s3347_s3 = int_to_ptr.vmem [resolvable:$true] %s3346_s3 }
0x1818   :  { %s4463_s16 = scalar_lea.vmem %s3347_s3, 256  ;;  %p4468_p7 = scmp.lt.s32.totalorder %s3347_s3, %s3347_s3 }
0x1819   :  { %p4464_p6 = scmp.ne.s32.totalorder %s3347_s3, %s4463_s16  ;;  %p4469_p8 = scmp.lt.s32.totalorder %s4463_s16, %s4463_s16 }
0x181b   :  { %p4470_p9 = por %p4469_p8, %p4468_p7 }
0x181d   :  { %p4471_p10 = pnand %p4470_p9, %p4464_p6 }
0x18cf   :  { %v3944_v31 = vpop.f32.mrb[26].mxu0 }
0x18d0   :  { %v3334_v32 = vadd.f32 %v3944_v31, %v3496_v21  ;;  %v3328_v15 = vpop.f32.mrb[27].mxu0 }
0x18d1   :  { %v3329_v20 = vadd.f32 %v3496_v21, %v3328_v15 }
0x18d2   :  { %v3338_v35 = vadd.f32 %v3334_v32, %v5031_v1 }
0x18d3   :  { %v3337_v33 = vadd.f32 %v3329_v20, %v5034_v36 }
0x18d4   :  { %3340 = vst.msk [vmem:[#allocation10 + $0x8] sm:$0xff] %vm121_vm0, %v3338_v35 }
0x18d5   :  { %3339 = vst.msk [vmem:[#allocation10] sm:$0xff] %vm121_vm0, %v3337_v33 }
0x18d6   :  { %4474 = shalt.err (!%p4471_p10)
}
0x18d7   :  { %s4475_s11 = scalar_lea.hbm %s5160_s14, 256 }
0x18d8   :  { %p4476_p11 = scmp.ne.s32.totalorder %s5160_s14, %s4475_s11  ;;  %p4479_p12 = scmp.lt.u32.totalorder %s4475_s11, %s5160_s14 }
0x18da   :  { %p4481_p13 = pnand %p4479_p12, %p4476_p11 }
0x18dc   :  { %4484 = shalt.err (!%p4481_p13)
}
0x18dd   :  { %3352 = dma.vmem_to_hbm [thread:$0]  %s3347_s3, 256, %s5160_s14, [#allocation4], %s4497_s18, %s4497_s18, %s4498_s19  }
0x18de   :  { %4491 = dma.done.wait [#allocation4], 256  }
0x18df   :  { %4492 = vsyncadd [#allocation4], 4294967040 }
0x18e0   :  { %4493 = dma.done.wait [#allocation12], 512  }
0x18e1   :  { %4494 = vsyncadd [#allocation12], 4294966784 }
0x18e2   :  { %3386 = vsyncpa [#allocation3], 1 }
0x18e3   :  { %3387 = vsyncpa [#allocation6], 1 }
0x18e4   :  { %3388 = vsyncpa [#allocation9], 1 }
0x18e5   :  { %3389 = vsyncpa [#allocation4], 1 }
0x18e6   :  { %3390 = vsyncpa [#allocation12], 1 }

</bundles_post_ra>
